<compile_context>
chip_gen: v6e
topology: v6e:2x2x1
jax: 0.10.0
libtpu: 0.0.40
codegen_flags: <defaults>
</compile_context>

<pallas_src>
import jax
import jax.numpy as jnp
from jax import lax
from jax.experimental import pallas as pl
from jax.experimental.pallas import tpu as pltpu

# ---- model hyperparameters (small but lane/sublane aligned) ------------------
B = 32           # batch (two batch tiles -> v7x megacore split)
BT = 16          # batch tile (sublane-aligned)
S = 16           # padded sequence length
V = 2048         # vocab size (bf16 table = 512 KiB, VMEM-resident)
E = 128          # embedding size (lane-dense)
C = 128          # num classes (lane-dense)
PAD_ID = 0
UNK_ID = 1
TOK = BT * S     # tokens handled per grid step (lane-dense = 256)
# aggr = 'mean'


def conlid_kernel(ids_row_ref, ids_col_ref, emb_ref, w_ref, b_ref, out_ref):
    """Fused one-hot gather + masked mean + linear head for one batch tile.

    ids_row_ref : (1, TOK)  int32    flat token ids (lane-major, for mask/segments)
    ids_col_ref : (TOK, 1)  int32    flat token ids (sublane-major, for one-hot)
    emb_ref     : (V, E)    bfloat16 embedding table (VMEM resident)
    w_ref       : (E, C)    bfloat16 fc weight (pre-transposed)
    b_ref       : (1, C)    float32  fc bias
    out_ref     : (BT, C)   float32  logits for this batch tile
    """
    ids_row = ids_row_ref[...]                                        # (1, TOK)
    ids_col = ids_col_ref[...]                                        # (TOK, 1)

    # per-token validity mask (f32 throughout -> v5e-safe, no bf16 VPU ops)
    mask_row = jnp.logical_and(ids_row != PAD_ID,
                               ids_row != UNK_ID).astype(jnp.float32)  # (1, TOK)

    # segment/mask matrix: seg_w[b, t] = 1 iff token t belongs to local batch
    # row b and is a valid (non pad/unk) token.
    iota_b = lax.broadcasted_iota(jnp.int32, (BT, TOK), 0)
    iota_t = lax.broadcasted_iota(jnp.int32, (BT, TOK), 1)
    lower = iota_b * S
    seg = jnp.logical_and(iota_t >= lower, iota_t < lower + S)
    seg_w = seg.astype(jnp.float32) * mask_row                        # (BT, TOK)

    # valid-token count per row; clamp fully-masked rows to 1 (PyTorch would
    # produce NaN there -- documented divergence).
    denom = jnp.maximum(jnp.sum(seg_w, axis=-1, keepdims=True), 1.0)  # (BT, 1)

    # one-hot over the vocabulary (exact 0/1 values, safe in bf16)
    iota_v = lax.broadcasted_iota(jnp.int32, (TOK, V), 1)
    onehot = (ids_col == iota_v).astype(jnp.bfloat16)                 # (TOK, V)

    # coeff[b, v] = number of valid occurrences of token v in row b
    # (small exact integers -> lossless in bf16)
    coeff = jnp.dot(seg_w.astype(jnp.bfloat16), onehot,
                    preferred_element_type=jnp.float32)               # (BT, V)

    # masked sum of embedding rows: MXU matmul with f32 accumulation
    sent_sum = jnp.dot(coeff.astype(jnp.bfloat16), emb_ref[...],
                       preferred_element_type=jnp.float32)            # (BT, E)

    mean_emb = sent_sum / denom                                       # exact f32 div

    # fc head: bf16 MXU matmul, f32 accumulation
    out_ref[...] = (
        jnp.dot(mean_emb.astype(jnp.bfloat16), w_ref[...],
                preferred_element_type=jnp.float32)
        + b_ref[...]
    )                                                                 # (BT, C)


def conlid_forward(ids, emb_table, fc_w_t, fc_b2d):
    """ids: (B,S) int32; emb_table: (V,E) bf16; fc_w_t: (E,C) bf16; fc_b2d: (1,C) f32."""
    ids_row = ids.reshape(1, B * S)      # lane-major flat ids   (free, wrapper-side)
    ids_col = ids.reshape(B * S, 1)      # sublane-major flat ids

    return pl.pallas_call(
        conlid_kernel,
        out_shape=jax.ShapeDtypeStruct((B, C), jnp.float32),
        grid=(B // BT,),
        in_specs=[
            pl.BlockSpec((1, TOK), lambda i: (0, i)),     # ids (mask / segments)
            pl.BlockSpec((TOK, 1), lambda i: (i, 0)),     # ids (one-hot gather)
            pl.BlockSpec((V, E), lambda i: (0, 0)),       # embedding table (resident)
            pl.BlockSpec((E, C), lambda i: (0, 0)),       # fc weight (resident)
            pl.BlockSpec((1, C), lambda i: (0, 0)),       # fc bias
        ],
        out_specs=pl.BlockSpec((BT, C), lambda i: (i, 0)),
        compiler_params=pltpu.CompilerParams(
            dimension_semantics=("parallel",),            # megacore split over batch
            vmem_limit_bytes=32 * 1024 * 1024,            # explicit, v7x(64MiB)-safe
        ),
    )(ids_row, ids_col, emb_table, fc_w_t, fc_b2d)


def conlid_reference(ids, emb_table, fc_w_t, fc_b2d):
    """Pure-JAX reference matching the PyTorch forward (aggr='mean'), f32 math."""
    mask = jnp.logical_and(ids != PAD_ID, ids != UNK_ID).astype(jnp.float32)  # (B,S)
    emb = emb_table.astype(jnp.float32)[ids]                                  # (B,S,E)
    denom = jnp.maximum(jnp.sum(mask, axis=1, keepdims=True), 1.0)
    sent = jnp.sum(emb * mask[..., None], axis=1) / denom                     # (B,E)
    return sent @ fc_w_t.astype(jnp.float32) + fc_b2d                         # (B,C)


if __name__ == "__main__":
    key = jax.random.PRNGKey(0)
    k_ids, k_emb, k_w, k_b = jax.random.split(key, 4)

    # deterministic synthetic parameters (nn.Embedding + nn.Linear shapes)
    emb_table = (jax.random.normal(k_emb, (V, E), dtype=jnp.float32) * 0.1
                 ).astype(jnp.bfloat16)                                # (V, E) bf16
    fc_w = jax.random.normal(k_w, (C, E), dtype=jnp.float32) * 0.1     # torch Linear (C, E)
    fc_b = jax.random.normal(k_b, (C,), dtype=jnp.float32) * 0.1
    fc_w_t = fc_w.T.astype(jnp.bfloat16)                               # (E, C) bf16
    fc_b2d = fc_b.reshape(1, C)                                        # (1, C) f32

    # deterministic synthetic input ids: valid tokens in [2, V), plus one pad
    # and one unk per row to exercise the mask.
    ids = jax.random.randint(k_ids, (B, S), 2, V, dtype=jnp.int32)
    ids = ids.at[:, -1].set(PAD_ID)
    ids = ids.at[:, -2].set(UNK_ID)

    logits = conlid_forward(ids, emb_table, fc_w_t, fc_b2d)
    jax.block_until_ready(logits)

    ref = conlid_reference(ids, emb_table, fc_w_t, fc_b2d)
    assert logits.shape == (B, C)
    max_err = float(jnp.max(jnp.abs(logits - ref)))
    # only bf16 rounding of MXU operands vs the f32 reference -> tight tolerance
    assert jnp.allclose(logits, ref, atol=5e-3, rtol=5e-3), (
        f"mismatch vs reference, max abs err {max_err}")

    print("KERNEL_OK")
</pallas_src>

<mosaic_0001>
module attributes {stable_mosaic.version = 11 : i64} {
  func.func @conlid_kernel(%arg0: i32, %arg1: memref<1x256xi32, #tpu.memory_space<vmem>>, %arg2: memref<256x1xi32, #tpu.memory_space<vmem>>, %arg3: memref<2048x128xbf16, #tpu.memory_space<vmem>>, %arg4: memref<128x128xbf16, #tpu.memory_space<vmem>>, %arg5: memref<1x128xf32, #tpu.memory_space<vmem>>, %arg6: memref<16x128xf32, #tpu.memory_space<vmem>>) attributes {dimension_semantics = [#tpu.dimension_semantics<parallel>], iteration_bounds = array<i64: 2>, scalar_prefetch = 0 : i64, scratch_operands = 0 : i64, tpu.core_type = #tpu.core_type<tc>, window_params = [{transform_indices = @transform_0, window_bounds = array<i64: 1, 256>}, {transform_indices = @transform_1, window_bounds = array<i64: 256, 1>}, {pipeline_mode = #tpu.pipeline_mode<synchronous>, transform_indices = @transform_2, window_bounds = array<i64: 2048, 128>}, {pipeline_mode = #tpu.pipeline_mode<synchronous>, transform_indices = @transform_3, window_bounds = array<i64: 128, 128>}, {pipeline_mode = #tpu.pipeline_mode<synchronous>, transform_indices = @transform_4, window_bounds = array<i64: 1, 128>}, {transform_indices = @transform_5, window_bounds = array<i64: 16, 128>}]} {
    %c0 = arith.constant 0 : index
    %c0_0 = arith.constant 0 : index
    %0 = vector.load %arg1[%c0, %c0_0] : memref<1x256xi32, #tpu.memory_space<vmem>>, vector<1x256xi32>
    %c0_1 = arith.constant 0 : index
    %c0_2 = arith.constant 0 : index
    %1 = vector.load %arg2[%c0_1, %c0_2] : memref<256x1xi32, #tpu.memory_space<vmem>>, vector<256x1xi32>
    %c0_i32 = arith.constant 0 : i32
    %2 = vector.broadcast %c0_i32 : i32 to vector<1x256xi32>
    %3 = arith.cmpi ne, %0, %2 : vector<1x256xi32>
    %c1_i32 = arith.constant 1 : i32
    %4 = vector.broadcast %c1_i32 : i32 to vector<1x256xi32>
    %5 = arith.cmpi ne, %0, %4 : vector<1x256xi32>
    %6 = arith.andi %3, %5 : vector<1x256xi1>
    %7 = arith.extui %6 : vector<1x256xi1> to vector<1x256xi32>
    %8 = arith.sitofp %7 : vector<1x256xi32> to vector<1x256xf32>
    %9 = tpu.iota {dimensions = array<i32: 0>} : vector<16x256xi32>
    %10 = tpu.iota {dimensions = array<i32: 1>} : vector<16x256xi32>
    %c16_i32 = arith.constant 16 : i32
    %11 = vector.broadcast %c16_i32 : i32 to vector<16x256xi32>
    %12 = arith.muli %9, %11 : vector<16x256xi32>
    %13 = arith.cmpi sge, %10, %12 : vector<16x256xi32>
    %c16_i32_3 = arith.constant 16 : i32
    %14 = vector.broadcast %c16_i32_3 : i32 to vector<16x256xi32>
    %15 = arith.addi %12, %14 : vector<16x256xi32>
    %16 = arith.cmpi slt, %10, %15 : vector<16x256xi32>
    %17 = arith.andi %13, %16 : vector<16x256xi1>
    %18 = arith.extui %17 : vector<16x256xi1> to vector<16x256xi32>
    %19 = arith.sitofp %18 : vector<16x256xi32> to vector<16x256xf32>
    %20 = vector.broadcast %8 : vector<1x256xf32> to vector<16x256xf32>
    %21 = arith.mulf %19, %20 : vector<16x256xf32>
    %cst = arith.constant dense<0.000000e+00> : vector<16xf32>
    %22 = vector.multi_reduction <add>, %21, %cst [1] : vector<16x256xf32> to vector<16xf32>
    %23 = vector.shape_cast %22 : vector<16xf32> to vector<16x1xf32>
    %cst_4 = arith.constant 1.000000e+00 : f32
    %24 = vector.broadcast %cst_4 : f32 to vector<16x1xf32>
    %25 = arith.maximumf %23, %24 : vector<16x1xf32>
    %26 = tpu.iota {dimensions = array<i32: 1>} : vector<256x2048xi32>
    %27 = vector.broadcast %1 : vector<256x1xi32> to vector<256x2048xi32>
    %28 = arith.cmpi eq, %27, %26 : vector<256x2048xi32>
    %29 = arith.extui %28 : vector<256x2048xi1> to vector<256x2048xi32>
    %30 = arith.sitofp %29 : vector<256x2048xi32> to vector<256x2048xf32>
    %31 = arith.truncf %30 : vector<256x2048xf32> to vector<256x2048xbf16>
    %32 = arith.truncf %21 : vector<16x256xf32> to vector<16x256xbf16>
    %cst_5 = arith.constant dense<0.000000e+00> : vector<16x2048xf32>
    %33 = tpu.matmul %32, %31, %cst_5 {dimension_numbers = #tpu.dot_dimension_numbers<[1], [0], [0], [1], [0, 0, 1, 1], [], []>} : vector<16x256xbf16>, vector<256x2048xbf16>, vector<16x2048xf32> -> vector<16x2048xf32>
    %34 = arith.truncf %33 : vector<16x2048xf32> to vector<16x2048xbf16>
    %c0_6 = arith.constant 0 : index
    %c0_7 = arith.constant 0 : index
    %35 = vector.load %arg3[%c0_6, %c0_7] : memref<2048x128xbf16, #tpu.memory_space<vmem>>, vector<2048x128xbf16>
    %cst_8 = arith.constant dense<0.000000e+00> : vector<16x128xf32>
    %36 = tpu.matmul %34, %35, %cst_8 {dimension_numbers = #tpu.dot_dimension_numbers<[1], [0], [0], [1], [0, 0, 1, 1], [], []>} : vector<16x2048xbf16>, vector<2048x128xbf16>, vector<16x128xf32> -> vector<16x128xf32>
    %37 = vector.broadcast %25 : vector<16x1xf32> to vector<16x128xf32>
    %38 = arith.divf %36, %37 : vector<16x128xf32>
    %39 = arith.truncf %38 : vector<16x128xf32> to vector<16x128xbf16>
    %c0_9 = arith.constant 0 : index
    %c0_10 = arith.constant 0 : index
    %40 = vector.load %arg4[%c0_9, %c0_10] : memref<128x128xbf16, #tpu.memory_space<vmem>>, vector<128x128xbf16>
    %cst_11 = arith.constant dense<0.000000e+00> : vector<16x128xf32>
    %41 = tpu.matmul %39, %40, %cst_11 {dimension_numbers = #tpu.dot_dimension_numbers<[1], [0], [0], [1], [0, 0, 1, 1], [], []>} : vector<16x128xbf16>, vector<128x128xbf16>, vector<16x128xf32> -> vector<16x128xf32>
    %c0_12 = arith.constant 0 : index
    %c0_13 = arith.constant 0 : index
    %42 = vector.load %arg5[%c0_12, %c0_13] : memref<1x128xf32, #tpu.memory_space<vmem>>, vector<1x128xf32>
    %43 = vector.broadcast %42 : vector<1x128xf32> to vector<16x128xf32>
    %44 = arith.addf %41, %43 : vector<16x128xf32>
    %c0_14 = arith.constant 0 : index
    %c0_15 = arith.constant 0 : index
    %45 = vector.load %arg6[%c0_14, %c0_15] : memref<16x128xf32, #tpu.memory_space<vmem>>, vector<16x128xf32>
    tpu.vector_store %arg6[%c0_14, %c0_15], %44 {strides = array<i32>} : memref<16x128xf32, #tpu.memory_space<vmem>>, vector<16x128xf32>,
    return
  }
  func.func @transform_0(%arg0: i32) -> (i32, i32) {
    %c0_i32 = arith.constant 0 : i32
    %c0_i32_0 = arith.constant 0 : i32
    return %c0_i32, %arg0 : i32, i32
  }
  func.func @transform_1(%arg0: i32) -> (i32, i32) {
    %c0_i32 = arith.constant 0 : i32
    %c0_i32_0 = arith.constant 0 : i32
    return %arg0, %c0_i32 : i32, i32
  }
  func.func @transform_2(%arg0: i32) -> (i32, i32) {
    %c0_i32 = arith.constant 0 : i32
    %c0_i32_0 = arith.constant 0 : i32
    %c0_i32_1 = arith.constant 0 : i32
    return %c0_i32, %c0_i32_0 : i32, i32
  }
  func.func @transform_3(%arg0: i32) -> (i32, i32) {
    %c0_i32 = arith.constant 0 : i32
    %c0_i32_0 = arith.constant 0 : i32
    %c0_i32_1 = arith.constant 0 : i32
    return %c0_i32, %c0_i32_0 : i32, i32
  }
  func.func @transform_4(%arg0: i32) -> (i32, i32) {
    %c0_i32 = arith.constant 0 : i32
    %c0_i32_0 = arith.constant 0 : i32
    %c0_i32_1 = arith.constant 0 : i32
    return %c0_i32, %c0_i32_0 : i32, i32
  }
  func.func @transform_5(%arg0: i32) -> (i32, i32) {
    %c0_i32 = arith.constant 0 : i32
    %c0_i32_0 = arith.constant 0 : i32
    return %arg0, %c0_i32 : i32, i32
  }
}

</mosaic_0001>

<bundles_post_ra>
// kernel: tpu_custom_call.1
= control target key start
LH: loop header
LB: loop body
LE: loop exit
PB: predicated region body
PF: predicated region fallthrough
CT: control target
= control target key end

     0   :  { %10 = vsyncpa [#allocation3], 0  ;;  %s7553_s0 = inlined_call_operand.vmem [shape: s32[1,512], index: 0, kind: input, shape index: {}]   ;;  %s7554_s1 = inlined_call_operand.vmem [shape: s32[512,1], index: 1, kind: input, shape index: {}]   ;;  %s7555_s2 = inlined_call_operand.hbm [shape: bf16[2048,128], index: 2, kind: input, shape index: {}]   ;;  %s7556_s3 = inlined_call_operand.vmem [shape: bf16[128,128], index: 3, kind: input, shape index: {}]   ;;  %s7557_s4 = inlined_call_operand.vmem [shape: f32[1,128], index: 4, kind: input, shape index: {}]   ;;  %s7558_s5 = inlined_call_operand.hbm [shape: f32[32,128], index: 5, kind: output, shape index: {}]  }
   0x1   :  { %11 = vsyncpa [#allocation4], 0 }
   0x2   :  { %13 = vsyncpa [#allocation4 + $0x1], 0  ;;  %s5903_s18 = smov 0   ;;  %s5905_s19 = smov 0  }
   0x3   :  { %s5907_s20 = smov 0   ;;  %s5909_s21 = smov 0  }
   0x4 LB: > { %s5924_s22 = sadd.s32 4294967295, %s5861_s21   ;;  %s4184_s23 = sadd.s32 4294967294, %s5861_s21   ;;  %s5861_s21 = sphi %s5909_s21, %s7566_s21   ;;  %s5857_s20 = sphi %s5907_s20, %s7565_s20   ;;  %s5853_s19 = sphi %s5905_s19, %s7564_s19   ;;  %s5849_s18 = sphi %s5903_s18, %s7563_s18  }
   0x5   : > { %s5928_s24 = sadd.s32 1, %s5861_s21   ;;  %s141_s25 = sadd.s32 1, %s5857_s20 }
   0x6   : > { %s138_s26 = ssub.s32 %s5861_s21, %s5928_s24  ;;  %p151_p0 = scmp.ne.s32.totalorder %s5857_s20, %s5853_s19 }
   0x7   : > { %p139_p1 = scmp.eq.s32.totalorder %s138_s26, 0  ;;  %p152_p2 = scmp.eq.s32.totalorder %s5924_s22, 1 }
   0x8   : > { %p157_p3 = scmp.ne.s32.totalorder %s5853_s19, %s5849_s18  ;;  %p158_p4 = scmp.eq.s32.totalorder %s4184_s23, 1 }
   0x9   : > { %s5939_s27 = scalar_select %p139_p1, %s5857_s20, %s141_s25  }
   0xa   : > { %p5941_p5 = por %p152_p2, %p151_p0  ;;  %p5945_p6 = por %p158_p4, %p157_p3 }
   0xb   : > { %p4185_p7 = scmp.ge.s32.totalorder %s5861_s21, 1  ;;  %p165_p8 = scmp.lt.s32.totalorder %s5861_s21, 3 }
   0xc   : > { %s7560_s29 = scalar_select %p5945_p6, 1, 0 }
   0xd   : > { %p5585_p9 = scmp.eq.s32.totalorder %s5924_s22, 0  ;;  %p5952_p10 = pnand %p4185_p7, %p165_p8 }
   0xe   : > { %s5863_s6 = smov [#allocation2]  }
   0xf   : > { %s177_s7 = sshll.u32 %s5863_s6, 4  ;;  %p5577_p11 = pneg %p5952_p10  ;;  %s178_s7 = int_to_ptr.vmem [resolvable:$true] %s177_s7 }
  0x10   : > { %s5782_s8 = scalar_lea.vmem %s178_s7, 16384  ;;  %p5790_p3 = scmp.lt.s32.totalorder %s178_s7, %s178_s7 }
  0x11   : > { %p5578_p12 = pnand %p5585_p9, %p5577_p11  ;;  %p5783_p0 = scmp.ne.s32.totalorder %s178_s7, %s5782_s8 }
  0x12   : > { %p5791_p4 = scmp.lt.s32.totalorder %s5782_s8, %s5782_s8 }
  0x13   : > { %p5773_p13 = pneg %p5578_p12 }
  0x14   : > { %p5792_p6 = por %p5791_p4, %p5790_p3 }
  0x15   : > { %p5785_p1 = pnand %p5783_p0, %p5773_p13 }
  0x17   : > { %p5786_p2 = pneg %p5785_p1 }
  0x19   : > { %p5793_p7 = pnand %p5792_p6, %p5786_p2 }
  0x1b   : > { %5796 = shalt.err (!%p5793_p7)
}
  0x1c   : > { %s5864_s9 = smov 64   ;;  %s5865_s10 = smov 4  }
  0x1d   : > { %5580 = dma.hbm_to_vmem [thread:$0]  (!%p5578_p12), %s7555_s2, 16384, %s178_s7, [#allocation3], %s5864_s9, %s5864_s9, %s5865_s10  }
  0x1e   : > { %216 = sbr.rel (%p5952_p10) target bundleno = 1054 (0x41e), region = 40 }
  0x23   : > { %5840 = dma.done.wait (%p5585_p9), [#allocation3], 16384  }
  0x24   : > { %5842 = vsyncadd (%p5585_p9), [#allocation3], 4294950912  ;;  %s4192_s13 = sshll.u32 %s5924_s22, 5  ;;  %v5866_v0 = vmov 0   ;;  %v299_v33 = vlaneseq  ;;  %s4191_s23 = sshll.u32 %s5924_s22, 1  ;;  %v5867_v45 = vmov 0.0  }
  0x25   : > { %5630 = vset.pattern.permute.xlu1 %v5866_v0  ;;  %5629 = vset.pattern.permute.xlu0 %v5866_v0  ;;  %p254_p6 = scmp.lt.s32.totalorder %s4192_s13, 63  ;;  %p249_p8 = scmp.lt.s32.totalorder %s4191_s23, 3  ;;  %v5868_v0 = vmov 1.0|1.0  }
  0x26   : > { %v6007_v34 = vand.u32 127, %v299_v33  ;;  %v300_v35 = vshrl.u32 %v299_v33, 7  ;;  %s245_s6 = sand.u32 1, %s5853_s19   ;;  %s5365_s12 = sshll.u32 %s5924_s22, 8 }
  0x27   : > { %s7568_s13 = smov (!%p254_p6, %s4192_s13), 63  ;;  %s7570_s23 = smov (!%p249_p8, %s4191_s23), 3 }
  0x28   : > { %s4193_s14 = sshll.u32 %s7568_s13, 3  ;;  %v6011_v36 = vadd.s32 128, %v6007_v34  ;;  %v301_v37 = vadd.s32 8, %v300_v35  ;;  %v305_v38 = vmul.u32 16, %v300_v35  ;;  %v336_v39 = vsub.s32 1, %v300_v35  ;;  %s251_s30 = scalar_lea.vmem %s7553_s0, %s7570_s23 }
  0x29   : > { %s5973_s17 = scalar_lea.vmem %s7554_s1, %s4193_s14  ;;  %v261_v42 = vld [vmem:[%s251_s30] sm:$0x3]  ;;  %v332_v44 = vsub.s32 0, %v300_v35  ;;  %v6050_v60 = vadd.s32 384, %v6007_v34  ;;  %v6057_v63 = vadd.s32 256, %v6007_v34  ;;  %v6454_v33 = vadd.s32 768, %v6007_v34  ;;  %s7511_s15 = scalar_lea.hbm %s7558_s5, %s5365_s12 }
  0x2a   : > { %v276_v1 = vld [vmem:[%s5973_s17 + $0x70] sm:$0xff]  ;;  %v274_v2 = vld [vmem:[%s5973_s17 + $0x60] sm:$0xff]  ;;  %v277_v3 = vld [vmem:[%s5973_s17 + $0x78] sm:$0xff]  ;;  %v306_v40 = vmul.u32 16, %v301_v37  ;;  %vm308_vm0 = vcmp.ge.s32.totalorder %v6011_v36, %v305_v38  ;;  %v311_v41 = vadd.s32 16, %v305_v38  ;;  %vm294_vm3 = vcmp.ne.s32.totalorder %v261_v42, 0 }
  0x2b   : > { %409 = vperm.xlu0 %5629, %v276_v1   ;;  %403 = vperm.xlu1 %5630, %v274_v2   ;;  %v275_v4 = vld [vmem:[%s5973_s17 + $0x68] sm:$0xff]  ;;  %v273_v5 = vld [vmem:[%s5973_s17 + $0x58] sm:$0xff]  ;;  %v272_v6 = vld [vmem:[%s5973_s17 + $0x50] sm:$0xff]  ;;  %vm295_vm4 = vcmp.ne.s32.totalorder %v261_v42, 1  ;;  %vm307_vm6 = vcmp.ge.s32.totalorder %v6007_v34, %v305_v38  ;;  %v6770_v35 = vadd.s32 1152, %v6007_v34  ;;  %v6784_v37 = vadd.s32 1024, %v6007_v34 }
  0x2c   : > { %v271_v7 = vld [vmem:[%s5973_s17 + $0x48] sm:$0xff]  ;;  %v270_v8 = vld [vmem:[%s5973_s17 + $0x40] sm:$0xff]  ;;  %v269_v9 = vld [vmem:[%s5973_s17 + $0x38] sm:$0xff]  ;;  %vm310_vm1 = vcmp.ge.s32.totalorder %v6011_v36, %v306_v40  ;;  %v312_v43 = vadd.s32 16, %v306_v40  ;;  %vm314_vm2 = vcmp.lt.s32.totalorder %v6011_v36, %v311_v41  ;;  %vm313_vm7 = vcmp.lt.s32.totalorder %v6007_v34, %v311_v41  ;;  %s4190_s7 = sshll.u32 %s245_s6, 4  ;;  %s7513_s16 = scalar_lea.sflag [#allocation4], %s245_s6 }
  0x2d   : > { %v268_v10 = vld [vmem:[%s5973_s17 + $0x30] sm:$0xff]  ;;  %v267_v11 = vld [vmem:[%s5973_s17 + $0x28] sm:$0xff]  ;;  %v266_v12 = vld [vmem:[%s5973_s17 + $0x20] sm:$0xff]  ;;  %vm309_vm10 = vcmp.ge.s32.totalorder %v6007_v34, %v306_v40  ;;  %v6790_v38 = vadd.s32 1280, %v6007_v34  ;;  %v7114_v40 = vadd.s32 1920, %v6007_v34  ;;  %v7120_v41 = vadd.s32 1536, %v6007_v34 }
  0x2e   : > { %v265_v13 = vld [vmem:[%s5973_s17 + $0x18] sm:$0xff]  ;;  %v264_v14 = vld [vmem:[%s5973_s17 + $0x10] sm:$0xff]  ;;  %v263_v15 = vld [vmem:[%s5973_s17 + $0x8] sm:$0xff]  ;;  %vm316_vm9 = vcmp.lt.s32.totalorder %v6011_v36, %v312_v43  ;;  %vm315_vm11 = vcmp.lt.s32.totalorder %v6007_v34, %v312_v43  ;;  %v7126_v42 = vadd.s32 1792, %v6007_v34  ;;  %s247_s10 = scalar_lea.vmem [#allocation5], %s4190_s7  ;;  %s5870_s22 = smov [#allocation5]  }
  0x2f   : > { %412 = vperm.xlu0 %5629, %v277_v3   ;;  %406 = vperm.xlu1 %5630, %v275_v4   ;;  %v262_v16 = vld [vmem:[%s5973_s17] sm:$0xff]  ;;  %v293_v17 = vld [vmem:[%s5973_s17 + $0xf8] sm:$0xff]  ;;  %v292_v18 = vld [vmem:[%s5973_s17 + $0xf0] sm:$0xff]  ;;  %s4101_s11 = sshll.u32 %s247_s10, 4  ;;  %s5801_s23 = sshll.u32 %s5870_s22, 4  ;;  %s7506_s11 = int_to_ptr.vmem [resolvable:$true] %s4101_s11  ;;  %s5802_s23 = int_to_ptr.vmem [resolvable:$false] %s5801_s23 }
  0x30   : > { %v291_v19 = vld [vmem:[%s5973_s17 + $0xe8] sm:$0xff]  ;;  %v290_v20 = vld [vmem:[%s5973_s17 + $0xe0] sm:$0xff]  ;;  %v289_v21 = vld [vmem:[%s5973_s17 + $0xd8] sm:$0xff]  ;;  %s5803_s25 = scalar_lea.vmem %s5802_s23, 512  ;;  %p5804_p12 = scmp.lt.s32.totalorder %s7506_s11, %s5802_s23 }
  0x31   : > { %v288_v22 = vld [vmem:[%s5973_s17 + $0xd0] sm:$0xff]  ;;  %v287_v23 = vld [vmem:[%s5973_s17 + $0xc8] sm:$0xff]  ;;  %v286_v24 = vld [vmem:[%s5973_s17 + $0xc0] sm:$0xff] }
  0x32   : > { %v285_v25 = vld [vmem:[%s5973_s17 + $0xb8] sm:$0xff]  ;;  %v284_v26 = vld [vmem:[%s5973_s17 + $0xb0] sm:$0xff]  ;;  %v283_v27 = vld [vmem:[%s5973_s17 + $0xa8] sm:$0xff] }
  0x33   : > { %400 = vperm.xlu1 %5630, %v273_v5   ;;  %397 = vperm.xlu0 %5629, %v272_v6   ;;  %v282_v28 = vld [vmem:[%s5973_s17 + $0xa0] sm:$0xff]  ;;  %v281_v29 = vld [vmem:[%s5973_s17 + $0x98] sm:$0xff]  ;;  %v280_v30 = vld [vmem:[%s5973_s17 + $0x90] sm:$0xff] }
  0x34   : > { %v279_v31 = vld [vmem:[%s5973_s17 + $0x88] sm:$0xff]  ;;  %v278_v32 = vld [vmem:[%s5973_s17 + $0x80] sm:$0xff]  ;;  %vm318_vm5 = vmand %vm308_vm0, %vm314_vm2  ;;  %s5797_s17 = scalar_lea.vmem %s7506_s11, 256 }
  0x35   : > { %vm296_vm8 = vmand %vm294_vm3, %vm295_vm4  ;;  %v4196_v47 = vsel %vm318_vm5, 1.0, %v5867_v45  ;;  %v5632_v43 = vld [vmem:[#allocation2 + $0xf8] sm:$0xff]   ;;  %p5798_p9 = scmp.ne.s32.totalorder %s7506_s11, %s5797_s17  ;;  %p5805_p13 = scmp.lt.s32.totalorder %s5803_s25, %s5797_s17 }
  0x36   : > { %v4194_v46 = vsel %vm296_vm8, 1.0, %v5867_v45  ;;  %vm320_vm12 = vmand %vm310_vm1, %vm316_vm9 }
  0x37   : > { %394 = vperm.xlu1 %5630, %v271_v7   ;;  %391 = vperm.xlu0 %5629, %v270_v8   ;;  %v4198_v48 = vsel %vm320_vm12, 1.0, %v5867_v45  ;;  %v337_v49 = vrot.slane %v4194_v46, %v336_v39  ;;  %vm317_vm13 = vmand %vm307_vm6, %vm313_vm7  ;;  %v333_v50 = vrot.slane %v4194_v46, %v332_v44  ;;  %v7106_v39 = vadd.s32 1664, %v6007_v34  ;;  %v5633_v44 = vld [vmem:[#allocation2 + $0x38] sm:$0xff]   ;;  %p5799_p10 = pnand %p5798_p9, %p5941_p5  ;;  %p5806_p0 = por %p5805_p13, %p5804_p12 }
  0x38   : > { %vm319_vm14 = vmand %vm309_vm10, %vm315_vm11  ;;  %v4195_v51 = vsel %vm317_vm13, 1.0, %v5867_v45  ;;  %v5634_v46 = vld [vmem:[#allocation2 + $0xb8] sm:$0xff]  }
  0x39   : > { %v6030_v52 = vmul.f32 %v4196_v47, %v337_v49  ;;  %v6032_v53 = vmul.f32 %v4198_v48, %v337_v49  ;;  %v4197_v54 = vsel %vm319_vm14, 1.0, %v5867_v45  ;;  %v6035_v55 = vmul.f32 %v4195_v51, %v333_v50  ;;  %v5635_v47 = vld [vmem:[#allocation2 + $0x70] sm:$0xff]   ;;  %p5800_p11 = pneg %p5799_p10 }
  0x3a   : > { %v6037_v56 = vmul.f32 %v4197_v54, %v333_v50  ;;  %v5636_v48 = vld [vmem:[#allocation2 + $0xf0] sm:$0xff]  }
  0x3b   : > { %388 = vperm.xlu1 %5630, %v269_v9   ;;  %385 = vperm.xlu0 %5629, %v268_v10   ;;  %v6041_v57 = vpack.c.bf16 %v6032_v53, %v6030_v52  ;;  %v5637_v51 = vld [vmem:[#allocation2 + $0x30] sm:$0xff]   ;;  %p5807_p1 = pnand %p5806_p0, %p5800_p11 }
  0x3d   : > { %2288 = vmatprep.mubr.bf16.mxu0 %v6041_v57  ;;  %2331 = vmatprep.mubr.bf16.mxu1 %v6041_v57 }
  0x3f   : > { %382 = vperm.xlu1 %5630, %v267_v11   ;;  %379 = vperm.xlu0 %5629, %v266_v12  }
  0x43   : > { %376 = vperm.xlu1 %5630, %v265_v13   ;;  %373 = vperm.xlu0 %5629, %v264_v14  }
  0x47   : > { %370 = vperm.xlu1 %5630, %v263_v15   ;;  %367 = vperm.xlu0 %5629, %v262_v16  }
  0x4b   : > { %460 = vperm.xlu1 %5630, %v293_v17   ;;  %457 = vperm.xlu0 %5629, %v292_v18  }
  0x4f   : > { %454 = vperm.xlu1 %5630, %v291_v19   ;;  %451 = vperm.xlu0 %5629, %v290_v20  }
  0x53   : > { %448 = vperm.xlu1 %5630, %v289_v21   ;;  %445 = vperm.xlu0 %5629, %v288_v22  }
  0x57   : > { %442 = vperm.xlu1 %5630, %v287_v23   ;;  %439 = vperm.xlu0 %5629, %v286_v24  }
  0x5b   : > { %436 = vperm.xlu1 %5630, %v285_v25   ;;  %433 = vperm.xlu0 %5629, %v284_v26  }
  0x5f   : > { %430 = vperm.xlu1 %5630, %v283_v27   ;;  %427 = vperm.xlu0 %5629, %v282_v28  }
  0x63   : > { %424 = vperm.xlu1 %5630, %v281_v29   ;;  %421 = vperm.xlu0 %5629, %v280_v30   ;;  %v6430_v29 = vadd.s32 640, %v6007_v34  ;;  %v6438_v30 = vadd.s32 896, %v6007_v34 }
  0x67   : > { %418 = vperm.xlu1 %5630, %v279_v31   ;;  %415 = vperm.xlu0 %5629, %v278_v32   ;;  %v6444_v31 = vadd.s32 512, %v6007_v34  ;;  %v6451_v32 = vpack.c.bf16 %v6037_v56, %v6035_v55 }
  0xa6   : > { %v6045_v58 = vpop.permute.xlu0 %409  ;;  %v6047_v59 = vpop.permute.xlu1 %403 }
  0xa7   : > { %vm687_vm15 = vcmp.eq.s32.totalorder %v6045_v58, %v6011_v36  ;;  %vm689_vm4 = vcmp.eq.s32.totalorder %v6045_v58, %v6050_v60  ;;  %vm686_vm7 = vcmp.eq.s32.totalorder %v6045_v58, %v6007_v34  ;;  %vm655_vm8 = vcmp.eq.s32.totalorder %v6047_v59, %v6011_v36 }
  0xa8   : > { %vm688_vm11 = vcmp.eq.s32.totalorder %v6045_v58, %v6057_v63  ;;  %vm657_vm12 = vcmp.eq.s32.totalorder %v6047_v59, %v6050_v60 }
  0xaa   : > { %v6052_v61 = vpop.permute.xlu0 %412  ;;  %v6054_v62 = vpop.permute.xlu1 %406 }
  0xab   : > { %vm703_vm0 = vcmp.eq.s32.totalorder %v6052_v61, %v6011_v36  ;;  %vm705_vm1 = vcmp.eq.s32.totalorder %v6052_v61, %v6050_v60  ;;  %vm702_vm2 = vcmp.eq.s32.totalorder %v6052_v61, %v6007_v34  ;;  %vm704_vm5 = vcmp.eq.s32.totalorder %v6052_v61, %v6057_v63 }
  0xac   : > { %vm4711_vm3 = vmpackc.low %vm703_vm0, %vm687_vm15  ;;  %vm671_vm9 = vcmp.eq.s32.totalorder %v6054_v62, %v6011_v36  ;;  %vm673_vm13 = vcmp.eq.s32.totalorder %v6054_v62, %v6050_v60  ;;  %vm654_vm15 = vcmp.eq.s32.totalorder %v6047_v59, %v6007_v34  ;;  %vm670_vm0 = vcmp.eq.s32.totalorder %v6054_v62, %v6007_v34 }
  0xad   : > { %4712 = vmatprep.subr.msk.bf16.mxu0 %vm4711_vm3, %v5868_v0  ;;  %vm4775_vm6 = vmpackc.low %vm705_vm1, %vm689_vm4  ;;  %vm672_vm3 = vcmp.eq.s32.totalorder %v6054_v62, %v6057_v63 }
  0xae   : > { %4776 = vmatprep.subr.msk.bf16.mxu1 %vm4775_vm6, %v5868_v0  ;;  %vm4713_vm10 = vmpackc.low %vm702_vm2, %vm686_vm7  ;;  %v6081_v1 = vpop.permute.xlu1 %400  ;;  %v6083_v2 = vpop.permute.xlu0 %397  ;;  %vm656_vm2 = vcmp.eq.s32.totalorder %v6047_v59, %v6057_v63 }
  0xaf   : > { %4714 = vmatpush1.bf16.msk.msra.mxu0 %vm4713_vm10, %v5868_v0  ;;  %vm4777_vm14 = vmpackc.low %vm704_vm5, %vm688_vm11  ;;  %vm623_vm5 = vcmp.eq.s32.totalorder %v6083_v2, %v6011_v36  ;;  %vm639_vm6 = vcmp.eq.s32.totalorder %v6081_v1, %v6011_v36  ;;  %vm622_vm11 = vcmp.eq.s32.totalorder %v6083_v2, %v6007_v34 }
  0xb0   : > { %4778 = vmatpush1.bf16.msk.msra.mxu1 %vm4777_vm14, %v5868_v0  ;;  %vm4715_vm1 = vmpackc.low %vm671_vm9, %vm655_vm8  ;;  %vm625_vm8 = vcmp.eq.s32.totalorder %v6083_v2, %v6050_v60  ;;  %vm641_vm9 = vcmp.eq.s32.totalorder %v6081_v1, %v6050_v60  ;;  %vm624_vm14 = vcmp.eq.s32.totalorder %v6083_v2, %v6057_v63 }
  0xb1   : > { %4716 = vmatprep.subr.msk.bf16.mxu0 %vm4715_vm1, %v5868_v0  ;;  %vm4779_vm4 = vmpackc.low %vm673_vm13, %vm657_vm12  ;;  %vm638_vm12 = vcmp.eq.s32.totalorder %v6081_v1, %v6007_v34 }
  0xb2   : > { %4780 = vmatprep.subr.msk.bf16.mxu1 %vm4779_vm4, %v5868_v0  ;;  %vm4717_vm7 = vmpackc.low %vm670_vm0, %vm654_vm15  ;;  %v6108_v3 = vpop.permute.xlu1 %394  ;;  %v6110_v4 = vpop.permute.xlu0 %391  ;;  %vm640_vm15 = vcmp.eq.s32.totalorder %v6081_v1, %v6057_v63 }
  0xb3   : > { %4718 = vmatpush1.bf16.msk.msra.mxu0 %vm4717_vm7, %v5868_v0  ;;  %vm4781_vm10 = vmpackc.low %vm672_vm3, %vm656_vm2  ;;  %vm591_vm1 = vcmp.eq.s32.totalorder %v6110_v4, %v6011_v36  ;;  %vm607_vm2 = vcmp.eq.s32.totalorder %v6108_v3, %v6011_v36  ;;  %vm593_vm4 = vcmp.eq.s32.totalorder %v6110_v4, %v6050_v60  ;;  %vm590_vm7 = vcmp.eq.s32.totalorder %v6110_v4, %v6007_v34 }
  0xb4   : > { %4782 = vmatpush1.bf16.msk.msra.mxu1 %vm4781_vm10, %v5868_v0  ;;  %vm4719_vm13 = vmpackc.low %vm639_vm6, %vm623_vm5  ;;  %vm609_vm5 = vcmp.eq.s32.totalorder %v6108_v3, %v6050_v60  ;;  %vm592_vm10 = vcmp.eq.s32.totalorder %v6110_v4, %v6057_v63 }
  0xb5   : > { %4720 = vmatprep.subr.msk.bf16.mxu0 %vm4719_vm13, %v5868_v0  ;;  %vm4783_vm0 = vmpackc.low %vm641_vm9, %vm625_vm8  ;;  %vm606_vm8 = vcmp.eq.s32.totalorder %v6108_v3, %v6007_v34 }
  0xb6   : > { %4784 = vmatprep.subr.msk.bf16.mxu1 %vm4783_vm0, %v5868_v0  ;;  %vm4721_vm3 = vmpackc.low %vm638_vm12, %vm622_vm11  ;;  %v6132_v5 = vpop.permute.xlu1 %388  ;;  %v6134_v6 = vpop.permute.xlu0 %385  ;;  %vm608_vm11 = vcmp.eq.s32.totalorder %v6108_v3, %v6057_v63 }
  0xb7   : > { %4722 = vmatpush1.bf16.msk.msra.mxu0 %vm4721_vm3, %v5868_v0  ;;  %vm4785_vm6 = vmpackc.low %vm640_vm15, %vm624_vm14  ;;  %vm559_vm13 = vcmp.eq.s32.totalorder %v6134_v6, %v6011_v36  ;;  %vm575_vm14 = vcmp.eq.s32.totalorder %v6132_v5, %v6011_v36  ;;  %vm561_vm0 = vcmp.eq.s32.totalorder %v6134_v6, %v6050_v60  ;;  %vm558_vm3 = vcmp.eq.s32.totalorder %v6134_v6, %v6007_v34 }
  0xb8   : > { %4786 = vmatpush1.bf16.msk.msra.mxu1 %vm4785_vm6, %v5868_v0  ;;  %vm4723_vm9 = vmpackc.low %vm607_vm2, %vm591_vm1  ;;  %vm577_vm1 = vcmp.eq.s32.totalorder %v6132_v5, %v6050_v60  ;;  %vm560_vm6 = vcmp.eq.s32.totalorder %v6134_v6, %v6057_v63 }
  0xb9   : > { %4724 = vmatprep.subr.msk.bf16.mxu0 %vm4723_vm9, %v5868_v0  ;;  %vm4787_vm12 = vmpackc.low %vm609_vm5, %vm593_vm4  ;;  %vm574_vm4 = vcmp.eq.s32.totalorder %v6132_v5, %v6007_v34 }
  0xba   : > { %4788 = vmatprep.subr.msk.bf16.mxu1 %vm4787_vm12, %v5868_v0  ;;  %vm4725_vm15 = vmpackc.low %vm606_vm8, %vm590_vm7  ;;  %v6156_v7 = vpop.permute.xlu1 %382  ;;  %v6158_v8 = vpop.permute.xlu0 %379  ;;  %vm576_vm7 = vcmp.eq.s32.totalorder %v6132_v5, %v6057_v63 }
  0xbb   : > { %4726 = vmatpush1.bf16.msk.msra.mxu0 %vm4725_vm15, %v5868_v0  ;;  %vm4789_vm2 = vmpackc.low %vm608_vm11, %vm592_vm10  ;;  %vm527_vm9 = vcmp.eq.s32.totalorder %v6158_v8, %v6011_v36  ;;  %vm543_vm10 = vcmp.eq.s32.totalorder %v6156_v7, %v6011_v36  ;;  %vm529_vm12 = vcmp.eq.s32.totalorder %v6158_v8, %v6050_v60  ;;  %vm526_vm15 = vcmp.eq.s32.totalorder %v6158_v8, %v6007_v34 }
  0xbc   : > { %4790 = vmatpush1.bf16.msk.msra.mxu1 %vm4789_vm2, %v5868_v0  ;;  %vm4727_vm5 = vmpackc.low %vm575_vm14, %vm559_vm13  ;;  %vm545_vm13 = vcmp.eq.s32.totalorder %v6156_v7, %v6050_v60  ;;  %vm528_vm2 = vcmp.eq.s32.totalorder %v6158_v8, %v6057_v63 }
  0xbd   : > { %4728 = vmatprep.subr.msk.bf16.mxu0 %vm4727_vm5, %v5868_v0  ;;  %vm4791_vm8 = vmpackc.low %vm577_vm1, %vm561_vm0  ;;  %vm542_vm0 = vcmp.eq.s32.totalorder %v6156_v7, %v6007_v34 }
  0xbe   : > { %4792 = vmatprep.subr.msk.bf16.mxu1 %vm4791_vm8, %v5868_v0  ;;  %vm4729_vm11 = vmpackc.low %vm574_vm4, %vm558_vm3  ;;  %v6180_v9 = vpop.permute.xlu1 %376  ;;  %v6182_v10 = vpop.permute.xlu0 %373  ;;  %vm544_vm3 = vcmp.eq.s32.totalorder %v6156_v7, %v6057_v63 }
  0xbf   : > { %4730 = vmatpush1.bf16.msk.msra.mxu0 %vm4729_vm11, %v5868_v0  ;;  %vm4793_vm14 = vmpackc.low %vm576_vm7, %vm560_vm6  ;;  %vm495_vm5 = vcmp.eq.s32.totalorder %v6182_v10, %v6011_v36  ;;  %vm511_vm6 = vcmp.eq.s32.totalorder %v6180_v9, %v6011_v36  ;;  %vm497_vm8 = vcmp.eq.s32.totalorder %v6182_v10, %v6050_v60  ;;  %vm494_vm11 = vcmp.eq.s32.totalorder %v6182_v10, %v6007_v34 }
  0xc0   : > { %4794 = vmatpush1.bf16.msk.msra.mxu1 %vm4793_vm14, %v5868_v0  ;;  %vm4731_vm1 = vmpackc.low %vm543_vm10, %vm527_vm9  ;;  %vm513_vm9 = vcmp.eq.s32.totalorder %v6180_v9, %v6050_v60  ;;  %vm496_vm14 = vcmp.eq.s32.totalorder %v6182_v10, %v6057_v63 }
  0xc1   : > { %4732 = vmatprep.subr.msk.bf16.mxu0 %vm4731_vm1, %v5868_v0  ;;  %vm4795_vm4 = vmpackc.low %vm545_vm13, %vm529_vm12  ;;  %vm510_vm12 = vcmp.eq.s32.totalorder %v6180_v9, %v6007_v34 }
  0xc2   : > { %4796 = vmatprep.subr.msk.bf16.mxu1 %vm4795_vm4, %v5868_v0  ;;  %vm4733_vm7 = vmpackc.low %vm542_vm0, %vm526_vm15  ;;  %v6204_v11 = vpop.permute.xlu1 %370  ;;  %v6206_v12 = vpop.permute.xlu0 %367  ;;  %vm512_vm15 = vcmp.eq.s32.totalorder %v6180_v9, %v6057_v63 }
  0xc3   : > { %4734 = vmatpush1.bf16.msk.msra.mxu0 %vm4733_vm7, %v5868_v0  ;;  %vm4797_vm10 = vmpackc.low %vm544_vm3, %vm528_vm2  ;;  %vm463_vm1 = vcmp.eq.s32.totalorder %v6206_v12, %v6011_v36  ;;  %vm479_vm2 = vcmp.eq.s32.totalorder %v6204_v11, %v6011_v36  ;;  %vm465_vm4 = vcmp.eq.s32.totalorder %v6206_v12, %v6050_v60  ;;  %vm462_vm7 = vcmp.eq.s32.totalorder %v6206_v12, %v6007_v34 }
  0xc4   : > { %4798 = vmatpush1.bf16.msk.msra.mxu1 %vm4797_vm10, %v5868_v0  ;;  %vm4735_vm13 = vmpackc.low %vm511_vm6, %vm495_vm5  ;;  %vm481_vm5 = vcmp.eq.s32.totalorder %v6204_v11, %v6050_v60  ;;  %vm464_vm10 = vcmp.eq.s32.totalorder %v6206_v12, %v6057_v63 }
  0xc5   : > { %4736 = vmatprep.subr.msk.bf16.mxu0 %vm4735_vm13, %v5868_v0  ;;  %vm4799_vm0 = vmpackc.low %vm513_vm9, %vm497_vm8  ;;  %vm478_vm8 = vcmp.eq.s32.totalorder %v6204_v11, %v6007_v34 }
  0xc6   : > { %4800 = vmatprep.subr.msk.bf16.mxu1 %vm4799_vm0, %v5868_v0  ;;  %vm4737_vm3 = vmpackc.low %vm510_vm12, %vm494_vm11  ;;  %v6228_v13 = vpop.permute.xlu1 %460  ;;  %v6230_v14 = vpop.permute.xlu0 %457  ;;  %vm480_vm11 = vcmp.eq.s32.totalorder %v6204_v11, %v6057_v63 }
  0xc7   : > { %4738 = vmatpush1.bf16.msk.msra.mxu0 %vm4737_vm3, %v5868_v0  ;;  %vm4801_vm6 = vmpackc.low %vm512_vm15, %vm496_vm14  ;;  %vm943_vm13 = vcmp.eq.s32.totalorder %v6230_v14, %v6011_v36  ;;  %vm959_vm14 = vcmp.eq.s32.totalorder %v6228_v13, %v6011_v36  ;;  %vm945_vm0 = vcmp.eq.s32.totalorder %v6230_v14, %v6050_v60  ;;  %vm942_vm3 = vcmp.eq.s32.totalorder %v6230_v14, %v6007_v34 }
  0xc8   : > { %4802 = vmatpush1.bf16.msk.msra.mxu1 %vm4801_vm6, %v5868_v0  ;;  %vm4739_vm9 = vmpackc.low %vm479_vm2, %vm463_vm1  ;;  %vm961_vm1 = vcmp.eq.s32.totalorder %v6228_v13, %v6050_v60  ;;  %vm944_vm6 = vcmp.eq.s32.totalorder %v6230_v14, %v6057_v63 }
  0xc9   : > { %4740 = vmatprep.subr.msk.bf16.mxu0 %vm4739_vm9, %v5868_v0  ;;  %vm4803_vm12 = vmpackc.low %vm481_vm5, %vm465_vm4  ;;  %vm958_vm4 = vcmp.eq.s32.totalorder %v6228_v13, %v6007_v34 }
  0xca   : > { %4804 = vmatprep.subr.msk.bf16.mxu1 %vm4803_vm12, %v5868_v0  ;;  %v6252_v15 = vpop.permute.xlu1 %454  ;;  %vm4741_vm15 = vmpackc.low %vm478_vm8, %vm462_vm7  ;;  %v6254_v16 = vpop.permute.xlu0 %451  ;;  %vm960_vm7 = vcmp.eq.s32.totalorder %v6228_v13, %v6057_v63 }
  0xcb   : > { %4742 = vmatpush1.bf16.msk.msra.mxu0 %vm4741_vm15, %v5868_v0  ;;  %vm4805_vm2 = vmpackc.low %vm480_vm11, %vm464_vm10  ;;  %vm911_vm9 = vcmp.eq.s32.totalorder %v6254_v16, %v6011_v36  ;;  %vm927_vm10 = vcmp.eq.s32.totalorder %v6252_v15, %v6011_v36  ;;  %vm913_vm12 = vcmp.eq.s32.totalorder %v6254_v16, %v6050_v60  ;;  %vm910_vm15 = vcmp.eq.s32.totalorder %v6254_v16, %v6007_v34 }
  0xcc   : > { %4806 = vmatpush1.bf16.msk.msra.mxu1 %vm4805_vm2, %v5868_v0  ;;  %vm4743_vm5 = vmpackc.low %vm959_vm14, %vm943_vm13  ;;  %vm929_vm13 = vcmp.eq.s32.totalorder %v6252_v15, %v6050_v60  ;;  %vm912_vm2 = vcmp.eq.s32.totalorder %v6254_v16, %v6057_v63 }
  0xcd   : > { %4744 = vmatprep.subr.msk.bf16.mxu0 %vm4743_vm5, %v5868_v0  ;;  %vm4807_vm8 = vmpackc.low %vm961_vm1, %vm945_vm0  ;;  %vm926_vm0 = vcmp.eq.s32.totalorder %v6252_v15, %v6007_v34 }
  0xce   : > { %4808 = vmatprep.subr.msk.bf16.mxu1 %vm4807_vm8, %v5868_v0  ;;  %v6276_v17 = vpop.permute.xlu1 %448  ;;  %vm4745_vm11 = vmpackc.low %vm958_vm4, %vm942_vm3  ;;  %v6278_v18 = vpop.permute.xlu0 %445  ;;  %vm928_vm3 = vcmp.eq.s32.totalorder %v6252_v15, %v6057_v63 }
  0xcf   : > { %4746 = vmatpush2.bf16.msk.msra.mxu0 %vm4745_vm11, %v5868_v0  ;;  %vm4809_vm14 = vmpackc.low %vm960_vm7, %vm944_vm6  ;;  %vm879_vm5 = vcmp.eq.s32.totalorder %v6278_v18, %v6011_v36  ;;  %vm895_vm6 = vcmp.eq.s32.totalorder %v6276_v17, %v6011_v36  ;;  %vm881_vm8 = vcmp.eq.s32.totalorder %v6278_v18, %v6050_v60  ;;  %vm878_vm11 = vcmp.eq.s32.totalorder %v6278_v18, %v6007_v34 }
  0xd0   : > { %4810 = vmatpush2.bf16.msk.msra.mxu1 %vm4809_vm14, %v5868_v0  ;;  %vm4747_vm1 = vmpackc.low %vm927_vm10, %vm911_vm9  ;;  %vm897_vm9 = vcmp.eq.s32.totalorder %v6276_v17, %v6050_v60  ;;  %vm880_vm14 = vcmp.eq.s32.totalorder %v6278_v18, %v6057_v63 }
  0xd1   : > { %4748 = vmatprep.subr.msk.bf16.mxu0 %vm4747_vm1, %v5868_v0  ;;  %vm4811_vm4 = vmpackc.low %vm929_vm13, %vm913_vm12  ;;  %vm894_vm12 = vcmp.eq.s32.totalorder %v6276_v17, %v6007_v34 }
  0xd2   : > { %4812 = vmatprep.subr.msk.bf16.mxu1 %vm4811_vm4, %v5868_v0  ;;  %v6300_v19 = vpop.permute.xlu1 %442  ;;  %vm4749_vm7 = vmpackc.low %vm926_vm0, %vm910_vm15  ;;  %v6302_v20 = vpop.permute.xlu0 %439  ;;  %vm896_vm15 = vcmp.eq.s32.totalorder %v6276_v17, %v6057_v63 }
  0xd3   : > { %4750 = vmatpush2.bf16.msk.msra.mxu0 %vm4749_vm7, %v5868_v0  ;;  %vm4813_vm10 = vmpackc.low %vm928_vm3, %vm912_vm2  ;;  %vm847_vm1 = vcmp.eq.s32.totalorder %v6302_v20, %v6011_v36  ;;  %vm863_vm2 = vcmp.eq.s32.totalorder %v6300_v19, %v6011_v36  ;;  %vm849_vm4 = vcmp.eq.s32.totalorder %v6302_v20, %v6050_v60  ;;  %vm846_vm7 = vcmp.eq.s32.totalorder %v6302_v20, %v6007_v34 }
  0xd4   : > { %4814 = vmatpush2.bf16.msk.msra.mxu1 %vm4813_vm10, %v5868_v0  ;;  %vm4751_vm13 = vmpackc.low %vm895_vm6, %vm879_vm5  ;;  %vm865_vm5 = vcmp.eq.s32.totalorder %v6300_v19, %v6050_v60  ;;  %vm848_vm10 = vcmp.eq.s32.totalorder %v6302_v20, %v6057_v63 }
  0xd5   : > { %4752 = vmatprep.subr.msk.bf16.mxu0 %vm4751_vm13, %v5868_v0  ;;  %vm4815_vm0 = vmpackc.low %vm897_vm9, %vm881_vm8  ;;  %vm862_vm8 = vcmp.eq.s32.totalorder %v6300_v19, %v6007_v34 }
  0xd6   : > { %4816 = vmatprep.subr.msk.bf16.mxu1 %vm4815_vm0, %v5868_v0  ;;  %v6324_v21 = vpop.permute.xlu1 %436  ;;  %vm4753_vm3 = vmpackc.low %vm894_vm12, %vm878_vm11  ;;  %v6326_v22 = vpop.permute.xlu0 %433  ;;  %vm864_vm11 = vcmp.eq.s32.totalorder %v6300_v19, %v6057_v63 }
  0xd7   : > { %4754 = vmatpush2.bf16.msk.msra.mxu0 %vm4753_vm3, %v5868_v0  ;;  %vm4817_vm6 = vmpackc.low %vm896_vm15, %vm880_vm14  ;;  %vm815_vm13 = vcmp.eq.s32.totalorder %v6326_v22, %v6011_v36  ;;  %vm831_vm14 = vcmp.eq.s32.totalorder %v6324_v21, %v6011_v36  ;;  %vm817_vm0 = vcmp.eq.s32.totalorder %v6326_v22, %v6050_v60  ;;  %vm814_vm3 = vcmp.eq.s32.totalorder %v6326_v22, %v6007_v34 }
  0xd8   : > { %4818 = vmatpush2.bf16.msk.msra.mxu1 %vm4817_vm6, %v5868_v0  ;;  %vm4755_vm9 = vmpackc.low %vm863_vm2, %vm847_vm1  ;;  %vm833_vm1 = vcmp.eq.s32.totalorder %v6324_v21, %v6050_v60  ;;  %vm816_vm6 = vcmp.eq.s32.totalorder %v6326_v22, %v6057_v63 }
  0xd9   : > { %4756 = vmatprep.subr.msk.bf16.mxu0 %vm4755_vm9, %v5868_v0  ;;  %vm4819_vm12 = vmpackc.low %vm865_vm5, %vm849_vm4  ;;  %vm830_vm4 = vcmp.eq.s32.totalorder %v6324_v21, %v6007_v34 }
  0xda   : > { %4820 = vmatprep.subr.msk.bf16.mxu1 %vm4819_vm12, %v5868_v0  ;;  %v6348_v23 = vpop.permute.xlu1 %430  ;;  %vm4757_vm15 = vmpackc.low %vm862_vm8, %vm846_vm7  ;;  %v6350_v24 = vpop.permute.xlu0 %427  ;;  %vm832_vm7 = vcmp.eq.s32.totalorder %v6324_v21, %v6057_v63 }
  0xdb   : > { %4758 = vmatpush2.bf16.msk.msra.mxu0 %vm4757_vm15, %v5868_v0  ;;  %vm4821_vm2 = vmpackc.low %vm864_vm11, %vm848_vm10  ;;  %vm783_vm9 = vcmp.eq.s32.totalorder %v6350_v24, %v6011_v36  ;;  %vm799_vm10 = vcmp.eq.s32.totalorder %v6348_v23, %v6011_v36  ;;  %vm785_vm12 = vcmp.eq.s32.totalorder %v6350_v24, %v6050_v60  ;;  %vm782_vm15 = vcmp.eq.s32.totalorder %v6350_v24, %v6007_v34 }
  0xdc   : > { %4822 = vmatpush2.bf16.msk.msra.mxu1 %vm4821_vm2, %v5868_v0  ;;  %vm4759_vm5 = vmpackc.low %vm831_vm14, %vm815_vm13  ;;  %vm801_vm13 = vcmp.eq.s32.totalorder %v6348_v23, %v6050_v60  ;;  %vm784_vm2 = vcmp.eq.s32.totalorder %v6350_v24, %v6057_v63 }
  0xdd   : > { %4760 = vmatprep.subr.msk.bf16.mxu0 %vm4759_vm5, %v5868_v0  ;;  %vm4823_vm8 = vmpackc.low %vm833_vm1, %vm817_vm0  ;;  %vm798_vm0 = vcmp.eq.s32.totalorder %v6348_v23, %v6007_v34 }
  0xde   : > { %4824 = vmatprep.subr.msk.bf16.mxu1 %vm4823_vm8, %v5868_v0  ;;  %v6372_v25 = vpop.permute.xlu1 %424  ;;  %vm4761_vm11 = vmpackc.low %vm830_vm4, %vm814_vm3  ;;  %v6374_v26 = vpop.permute.xlu0 %421  ;;  %vm800_vm3 = vcmp.eq.s32.totalorder %v6348_v23, %v6057_v63 }
  0xdf   : > { %4762 = vmatpush2.bf16.msk.msra.mxu0 %vm4761_vm11, %v5868_v0  ;;  %vm4825_vm14 = vmpackc.low %vm832_vm7, %vm816_vm6  ;;  %vm751_vm5 = vcmp.eq.s32.totalorder %v6374_v26, %v6011_v36  ;;  %vm767_vm6 = vcmp.eq.s32.totalorder %v6372_v25, %v6011_v36  ;;  %vm753_vm8 = vcmp.eq.s32.totalorder %v6374_v26, %v6050_v60  ;;  %vm750_vm11 = vcmp.eq.s32.totalorder %v6374_v26, %v6007_v34 }
  0xe0   : > { %4826 = vmatpush2.bf16.msk.msra.mxu1 %vm4825_vm14, %v5868_v0  ;;  %vm4763_vm1 = vmpackc.low %vm799_vm10, %vm783_vm9  ;;  %vm769_vm9 = vcmp.eq.s32.totalorder %v6372_v25, %v6050_v60  ;;  %vm752_vm14 = vcmp.eq.s32.totalorder %v6374_v26, %v6057_v63 }
  0xe1   : > { %4764 = vmatprep.subr.msk.bf16.mxu0 %vm4763_vm1, %v5868_v0  ;;  %vm4827_vm4 = vmpackc.low %vm801_vm13, %vm785_vm12  ;;  %vm766_vm12 = vcmp.eq.s32.totalorder %v6372_v25, %v6007_v34 }
  0xe2   : > { %4828 = vmatprep.subr.msk.bf16.mxu1 %vm4827_vm4, %v5868_v0  ;;  %v6396_v27 = vpop.permute.xlu1 %418  ;;  %vm4765_vm7 = vmpackc.low %vm798_vm0, %vm782_vm15  ;;  %v6398_v28 = vpop.permute.xlu0 %415  ;;  %vm768_vm15 = vcmp.eq.s32.totalorder %v6372_v25, %v6057_v63 }
  0xe3   : > { %4766 = vmatpush2.bf16.msk.msra.mxu0 %vm4765_vm7, %v5868_v0  ;;  %vm4829_vm10 = vmpackc.low %vm800_vm3, %vm784_vm2  ;;  %vm719_vm1 = vcmp.eq.s32.totalorder %v6398_v28, %v6011_v36  ;;  %vm735_vm2 = vcmp.eq.s32.totalorder %v6396_v27, %v6011_v36  ;;  %vm721_vm4 = vcmp.eq.s32.totalorder %v6398_v28, %v6050_v60  ;;  %vm718_vm7 = vcmp.eq.s32.totalorder %v6398_v28, %v6007_v34 }
  0xe4   : > { %4830 = vmatpush2.bf16.msk.msra.mxu1 %vm4829_vm10, %v5868_v0  ;;  %vm4767_vm13 = vmpackc.low %vm767_vm6, %vm751_vm5  ;;  %vm737_vm5 = vcmp.eq.s32.totalorder %v6396_v27, %v6050_v60  ;;  %vm720_vm10 = vcmp.eq.s32.totalorder %v6398_v28, %v6057_v63  ;;  %v6778_v36 = vadd.s32 1408, %v6007_v34  ;;  %v5640_v60 = vld [vmem:[#allocation2 + $0xe8] sm:$0xff]  }
  0xe5   : > { %4768 = vmatprep.subr.msk.bf16.mxu0 %vm4767_vm13, %v5868_v0  ;;  %vm4831_vm0 = vmpackc.low %vm769_vm9, %vm753_vm8  ;;  %vm734_vm8 = vcmp.eq.s32.totalorder %v6396_v27, %v6007_v34  ;;  %vm707_vm13 = vcmp.eq.s32.totalorder %v6052_v61, %v6430_v29  ;;  %v5631_v34 = vld [vmem:[#allocation2 + $0x78] sm:$0xff]  }
  0xe6   : > { %4832 = vmatprep.subr.msk.bf16.mxu1 %vm4831_vm0, %v5868_v0  ;;  %vm4769_vm3 = vmpackc.low %vm766_vm12, %vm750_vm11  ;;  %vm736_vm11 = vcmp.eq.s32.totalorder %v6396_v27, %v6057_v63  ;;  %v5641_v63 = vld [vmem:[#allocation2 + $0x28] sm:$0xff]  }
  0xe7   : > { %4770 = vmatpush2.bf16.msk.msra.mxu0 %vm4769_vm3, %v5868_v0  ;;  %vm4833_vm6 = vmpackc.low %vm768_vm15, %vm752_vm14  ;;  %vm709_vm15 = vcmp.eq.s32.totalorder %v6052_v61, %v6438_v30 }
  0xe8   : > { %4834 = vmatpush2.bf16.msk.msra.mxu1 %vm4833_vm6, %v5868_v0  ;;  %vm4771_vm9 = vmpackc.low %vm735_vm2, %vm719_vm1  ;;  %vm691_vm1 = vcmp.eq.s32.totalorder %v6045_v58, %v6430_v29  ;;  %vm706_vm2 = vcmp.eq.s32.totalorder %v6052_v61, %v6444_v31 }
  0xe9   : > { %4772 = vmatprep.subr.msk.bf16.mxu0 %vm4771_vm9, %v5868_v0  ;;  %vm4835_vm12 = vmpackc.low %vm737_vm5, %vm721_vm4  ;;  %vm693_vm4 = vcmp.eq.s32.totalorder %v6045_v58, %v6438_v30  ;;  %vm708_vm5 = vcmp.eq.s32.totalorder %v6052_v61, %v6454_v33  ;;  %vm675_vm9 = vcmp.eq.s32.totalorder %v6054_v62, %v6430_v29 }
  0xea   : > { %4836 = vmatprep.subr.msk.bf16.mxu1 %vm4835_vm12, %v5868_v0  ;;  %vm4773_vm14 = vmpackc.low %vm734_vm8, %vm718_vm7  ;;  %vm690_vm7 = vcmp.eq.s32.totalorder %v6045_v58, %v6444_v31  ;;  %vm659_vm8 = vcmp.eq.s32.totalorder %v6047_v59, %v6430_v29  ;;  %vm661_vm12 = vcmp.eq.s32.totalorder %v6047_v59, %v6438_v30 }
  0xeb   : > { %4774 = vmatpush2.bf16.msk.msra.mxu0 %vm4773_vm14, %v5868_v0  ;;  %vm4837_vm0 = vmpackc.low %vm736_vm11, %vm720_vm10  ;;  %vm692_vm11 = vcmp.eq.s32.totalorder %v6045_v58, %v6454_v33 }
  0xec   : > { %4838 = vmatpush2.bf16.msk.msra.mxu1 %vm4837_vm0, %v5868_v0  ;;  %vm4839_vm3 = vmpackc.low %vm707_vm13, %vm691_vm1  ;;  %vm677_vm13 = vcmp.eq.s32.totalorder %v6054_v62, %v6438_v30  ;;  %vm674_vm0 = vcmp.eq.s32.totalorder %v6054_v62, %v6444_v31 }
  0xed   : > { %4840 = vmatprep.subr.msk.bf16.mxu0 %vm4839_vm3, %v5868_v0  ;;  %vm4903_vm6 = vmpackc.low %vm709_vm15, %vm693_vm4  ;;  %vm658_vm15 = vcmp.eq.s32.totalorder %v6047_v59, %v6444_v31  ;;  %vm676_vm3 = vcmp.eq.s32.totalorder %v6054_v62, %v6454_v33 }
  0xee   : > { %4904 = vmatprep.subr.msk.bf16.mxu1 %vm4903_vm6, %v5868_v0  ;;  %2289 = vmatmul.mubr.bf16.vlgmr.msra.gmra.mxu0 %v6451_v32  ;;  %vm4841_vm10 = vmpackc.low %vm706_vm2, %vm690_vm7  ;;  %vm660_vm2 = vcmp.eq.s32.totalorder %v6047_v59, %v6454_v33  ;;  %vm643_vm6 = vcmp.eq.s32.totalorder %v6081_v1, %v6430_v29 }
  0xef   : > { %2332 = vmatmul.mubr.bf16.vlgmr.msra.gmra.mxu1 %v6451_v32  ;;  %4842 = vmatpush1.bf16.msk.msra.mxu0 %vm4841_vm10, %v5868_v0  ;;  %vm4905_vm14 = vmpackc.low %vm708_vm5, %vm692_vm11  ;;  %vm627_vm5 = vcmp.eq.s32.totalorder %v6083_v2, %v6430_v29  ;;  %vm626_vm11 = vcmp.eq.s32.totalorder %v6083_v2, %v6444_v31 }
  0xf0   : > { %4906 = vmatpush1.bf16.msk.msra.mxu1 %vm4905_vm14, %v5868_v0  ;;  %vm4843_vm1 = vmpackc.low %vm675_vm9, %vm659_vm8  ;;  %2374 = vmatprep.mubr.bf16.mxu0 %v6041_v57  ;;  %vm629_vm8 = vcmp.eq.s32.totalorder %v6083_v2, %v6438_v30  ;;  %vm645_vm9 = vcmp.eq.s32.totalorder %v6081_v1, %v6438_v30  ;;  %vm628_vm14 = vcmp.eq.s32.totalorder %v6083_v2, %v6454_v33 }
  0xf1   : > { %4844 = vmatprep.subr.msk.bf16.mxu0 %vm4843_vm1, %v5868_v0  ;;  %vm4907_vm4 = vmpackc.low %vm677_vm13, %vm661_vm12  ;;  %2417 = vmatprep.mubr.bf16.mxu1 %v6041_v57  ;;  %vm642_vm12 = vcmp.eq.s32.totalorder %v6081_v1, %v6444_v31  ;;  %vm595_vm1 = vcmp.eq.s32.totalorder %v6110_v4, %v6430_v29 }
  0xf2   : > { %4908 = vmatprep.subr.msk.bf16.mxu1 %vm4907_vm4, %v5868_v0  ;;  %vm4845_vm7 = vmpackc.low %vm674_vm0, %vm658_vm15  ;;  %vm644_vm15 = vcmp.eq.s32.totalorder %v6081_v1, %v6454_v33  ;;  %vm597_vm4 = vcmp.eq.s32.totalorder %v6110_v4, %v6438_v30 }
  0xf3   : > { %4846 = vmatpush1.bf16.msk.msra.mxu0 %vm4845_vm7, %v5868_v0  ;;  %vm4909_vm10 = vmpackc.low %vm676_vm3, %vm660_vm2  ;;  %vm611_vm2 = vcmp.eq.s32.totalorder %v6108_v3, %v6430_v29  ;;  %vm594_vm7 = vcmp.eq.s32.totalorder %v6110_v4, %v6444_v31 }
  0xf4   : > { %4910 = vmatpush1.bf16.msk.msra.mxu1 %vm4909_vm10, %v5868_v0  ;;  %vm4847_vm13 = vmpackc.low %vm643_vm6, %vm627_vm5  ;;  %vm613_vm5 = vcmp.eq.s32.totalorder %v6108_v3, %v6438_v30  ;;  %vm596_vm10 = vcmp.eq.s32.totalorder %v6110_v4, %v6454_v33 }
  0xf5   : > { %4848 = vmatprep.subr.msk.bf16.mxu0 %vm4847_vm13, %v5868_v0  ;;  %vm4911_vm0 = vmpackc.low %vm645_vm9, %vm629_vm8  ;;  %vm610_vm8 = vcmp.eq.s32.totalorder %v6108_v3, %v6444_v31  ;;  %vm563_vm13 = vcmp.eq.s32.totalorder %v6134_v6, %v6430_v29 }
  0xf6   : > { %4912 = vmatprep.subr.msk.bf16.mxu1 %vm4911_vm0, %v5868_v0  ;;  %vm4849_vm3 = vmpackc.low %vm642_vm12, %vm626_vm11  ;;  %vm612_vm11 = vcmp.eq.s32.totalorder %v6108_v3, %v6454_v33  ;;  %vm565_vm0 = vcmp.eq.s32.totalorder %v6134_v6, %v6438_v30 }
  0xf7   : > { %4850 = vmatpush1.bf16.msk.msra.mxu0 %vm4849_vm3, %v5868_v0  ;;  %vm4913_vm6 = vmpackc.low %vm644_vm15, %vm628_vm14  ;;  %vm579_vm14 = vcmp.eq.s32.totalorder %v6132_v5, %v6430_v29  ;;  %vm562_vm3 = vcmp.eq.s32.totalorder %v6134_v6, %v6444_v31 }
  0xf8   : > { %4914 = vmatpush1.bf16.msk.msra.mxu1 %vm4913_vm6, %v5868_v0  ;;  %vm4851_vm9 = vmpackc.low %vm611_vm2, %vm595_vm1  ;;  %vm581_vm1 = vcmp.eq.s32.totalorder %v6132_v5, %v6438_v30  ;;  %vm564_vm6 = vcmp.eq.s32.totalorder %v6134_v6, %v6454_v33 }
  0xf9   : > { %4852 = vmatprep.subr.msk.bf16.mxu0 %vm4851_vm9, %v5868_v0  ;;  %vm4915_vm12 = vmpackc.low %vm613_vm5, %vm597_vm4  ;;  %vm578_vm4 = vcmp.eq.s32.totalorder %v6132_v5, %v6444_v31  ;;  %vm531_vm9 = vcmp.eq.s32.totalorder %v6158_v8, %v6430_v29 }
  0xfa   : > { %4916 = vmatprep.subr.msk.bf16.mxu1 %vm4915_vm12, %v5868_v0  ;;  %vm4853_vm15 = vmpackc.low %vm610_vm8, %vm594_vm7  ;;  %vm580_vm7 = vcmp.eq.s32.totalorder %v6132_v5, %v6454_v33  ;;  %vm533_vm12 = vcmp.eq.s32.totalorder %v6158_v8, %v6438_v30 }
  0xfb   : > { %4854 = vmatpush1.bf16.msk.msra.mxu0 %vm4853_vm15, %v5868_v0  ;;  %vm4917_vm2 = vmpackc.low %vm612_vm11, %vm596_vm10  ;;  %vm547_vm10 = vcmp.eq.s32.totalorder %v6156_v7, %v6430_v29  ;;  %vm530_vm15 = vcmp.eq.s32.totalorder %v6158_v8, %v6444_v31 }
  0xfc   : > { %4918 = vmatpush1.bf16.msk.msra.mxu1 %vm4917_vm2, %v5868_v0  ;;  %vm4855_vm5 = vmpackc.low %vm579_vm14, %vm563_vm13  ;;  %vm549_vm13 = vcmp.eq.s32.totalorder %v6156_v7, %v6438_v30  ;;  %vm532_vm2 = vcmp.eq.s32.totalorder %v6158_v8, %v6454_v33 }
  0xfd   : > { %4856 = vmatprep.subr.msk.bf16.mxu0 %vm4855_vm5, %v5868_v0  ;;  %vm4919_vm8 = vmpackc.low %vm581_vm1, %vm565_vm0  ;;  %vm546_vm0 = vcmp.eq.s32.totalorder %v6156_v7, %v6444_v31  ;;  %vm499_vm5 = vcmp.eq.s32.totalorder %v6182_v10, %v6430_v29 }
  0xfe   : > { %4920 = vmatprep.subr.msk.bf16.mxu1 %vm4919_vm8, %v5868_v0  ;;  %vm4857_vm11 = vmpackc.low %vm578_vm4, %vm562_vm3  ;;  %vm548_vm3 = vcmp.eq.s32.totalorder %v6156_v7, %v6454_v33  ;;  %vm501_vm8 = vcmp.eq.s32.totalorder %v6182_v10, %v6438_v30 }
  0xff   : > { %4858 = vmatpush1.bf16.msk.msra.mxu0 %vm4857_vm11, %v5868_v0  ;;  %vm4921_vm14 = vmpackc.low %vm580_vm7, %vm564_vm6  ;;  %vm515_vm6 = vcmp.eq.s32.totalorder %v6180_v9, %v6430_v29  ;;  %vm498_vm11 = vcmp.eq.s32.totalorder %v6182_v10, %v6444_v31 }
 0x100   : > { %4922 = vmatpush1.bf16.msk.msra.mxu1 %vm4921_vm14, %v5868_v0  ;;  %vm4859_vm1 = vmpackc.low %vm547_vm10, %vm531_vm9  ;;  %vm517_vm9 = vcmp.eq.s32.totalorder %v6180_v9, %v6438_v30  ;;  %vm500_vm14 = vcmp.eq.s32.totalorder %v6182_v10, %v6454_v33 }
 0x101   : > { %4860 = vmatprep.subr.msk.bf16.mxu0 %vm4859_vm1, %v5868_v0  ;;  %vm4923_vm4 = vmpackc.low %vm549_vm13, %vm533_vm12  ;;  %vm514_vm12 = vcmp.eq.s32.totalorder %v6180_v9, %v6444_v31  ;;  %vm467_vm1 = vcmp.eq.s32.totalorder %v6206_v12, %v6430_v29 }
 0x102   : > { %4924 = vmatprep.subr.msk.bf16.mxu1 %vm4923_vm4, %v5868_v0  ;;  %vm4861_vm7 = vmpackc.low %vm546_vm0, %vm530_vm15  ;;  %vm516_vm15 = vcmp.eq.s32.totalorder %v6180_v9, %v6454_v33  ;;  %vm469_vm4 = vcmp.eq.s32.totalorder %v6206_v12, %v6438_v30 }
 0x103   : > { %4862 = vmatpush1.bf16.msk.msra.mxu0 %vm4861_vm7, %v5868_v0  ;;  %vm4925_vm10 = vmpackc.low %vm548_vm3, %vm532_vm2  ;;  %vm483_vm2 = vcmp.eq.s32.totalorder %v6204_v11, %v6430_v29  ;;  %vm466_vm7 = vcmp.eq.s32.totalorder %v6206_v12, %v6444_v31 }
 0x104   : > { %4926 = vmatpush1.bf16.msk.msra.mxu1 %vm4925_vm10, %v5868_v0  ;;  %vm4863_vm13 = vmpackc.low %vm515_vm6, %vm499_vm5  ;;  %vm485_vm5 = vcmp.eq.s32.totalorder %v6204_v11, %v6438_v30  ;;  %vm468_vm10 = vcmp.eq.s32.totalorder %v6206_v12, %v6454_v33 }
 0x105   : > { %4864 = vmatprep.subr.msk.bf16.mxu0 %vm4863_vm13, %v5868_v0  ;;  %vm4927_vm0 = vmpackc.low %vm517_vm9, %vm501_vm8  ;;  %vm482_vm8 = vcmp.eq.s32.totalorder %v6204_v11, %v6444_v31  ;;  %vm947_vm13 = vcmp.eq.s32.totalorder %v6230_v14, %v6430_v29 }
 0x106   : > { %4928 = vmatprep.subr.msk.bf16.mxu1 %vm4927_vm0, %v5868_v0  ;;  %vm4865_vm3 = vmpackc.low %vm514_vm12, %vm498_vm11  ;;  %vm484_vm11 = vcmp.eq.s32.totalorder %v6204_v11, %v6454_v33  ;;  %vm949_vm0 = vcmp.eq.s32.totalorder %v6230_v14, %v6438_v30 }
 0x107   : > { %4866 = vmatpush1.bf16.msk.msra.mxu0 %vm4865_vm3, %v5868_v0  ;;  %vm4929_vm6 = vmpackc.low %vm516_vm15, %vm500_vm14  ;;  %vm963_vm14 = vcmp.eq.s32.totalorder %v6228_v13, %v6430_v29  ;;  %vm946_vm3 = vcmp.eq.s32.totalorder %v6230_v14, %v6444_v31 }
 0x108   : > { %4930 = vmatpush1.bf16.msk.msra.mxu1 %vm4929_vm6, %v5868_v0  ;;  %vm4867_vm9 = vmpackc.low %vm483_vm2, %vm467_vm1  ;;  %vm965_vm1 = vcmp.eq.s32.totalorder %v6228_v13, %v6438_v30  ;;  %vm948_vm6 = vcmp.eq.s32.totalorder %v6230_v14, %v6454_v33 }
 0x109   : > { %4868 = vmatprep.subr.msk.bf16.mxu0 %vm4867_vm9, %v5868_v0  ;;  %vm4931_vm12 = vmpackc.low %vm485_vm5, %vm469_vm4  ;;  %vm962_vm4 = vcmp.eq.s32.totalorder %v6228_v13, %v6444_v31  ;;  %vm915_vm9 = vcmp.eq.s32.totalorder %v6254_v16, %v6430_v29 }
 0x10a   : > { %4932 = vmatprep.subr.msk.bf16.mxu1 %vm4931_vm12, %v5868_v0  ;;  %vm4869_vm15 = vmpackc.low %vm482_vm8, %vm466_vm7  ;;  %vm964_vm7 = vcmp.eq.s32.totalorder %v6228_v13, %v6454_v33  ;;  %vm917_vm12 = vcmp.eq.s32.totalorder %v6254_v16, %v6438_v30 }
 0x10b   : > { %4870 = vmatpush1.bf16.msk.msra.mxu0 %vm4869_vm15, %v5868_v0  ;;  %vm4933_vm2 = vmpackc.low %vm484_vm11, %vm468_vm10  ;;  %vm931_vm10 = vcmp.eq.s32.totalorder %v6252_v15, %v6430_v29  ;;  %vm914_vm15 = vcmp.eq.s32.totalorder %v6254_v16, %v6444_v31 }
 0x10c   : > { %4934 = vmatpush1.bf16.msk.msra.mxu1 %vm4933_vm2, %v5868_v0  ;;  %vm4871_vm5 = vmpackc.low %vm963_vm14, %vm947_vm13  ;;  %vm933_vm13 = vcmp.eq.s32.totalorder %v6252_v15, %v6438_v30  ;;  %vm916_vm2 = vcmp.eq.s32.totalorder %v6254_v16, %v6454_v33 }
 0x10d   : > { %4872 = vmatprep.subr.msk.bf16.mxu0 %vm4871_vm5, %v5868_v0  ;;  %vm4935_vm8 = vmpackc.low %vm965_vm1, %vm949_vm0  ;;  %vm930_vm0 = vcmp.eq.s32.totalorder %v6252_v15, %v6444_v31  ;;  %vm883_vm5 = vcmp.eq.s32.totalorder %v6278_v18, %v6430_v29 }
 0x10e   : > { %4936 = vmatprep.subr.msk.bf16.mxu1 %vm4935_vm8, %v5868_v0  ;;  %vm4873_vm11 = vmpackc.low %vm962_vm4, %vm946_vm3  ;;  %vm932_vm3 = vcmp.eq.s32.totalorder %v6252_v15, %v6454_v33  ;;  %vm885_vm8 = vcmp.eq.s32.totalorder %v6278_v18, %v6438_v30 }
 0x10f   : > { %4874 = vmatpush2.bf16.msk.msra.mxu0 %vm4873_vm11, %v5868_v0  ;;  %vm4937_vm14 = vmpackc.low %vm964_vm7, %vm948_vm6  ;;  %vm899_vm6 = vcmp.eq.s32.totalorder %v6276_v17, %v6430_v29  ;;  %vm882_vm11 = vcmp.eq.s32.totalorder %v6278_v18, %v6444_v31 }
 0x110   : > { %4938 = vmatpush2.bf16.msk.msra.mxu1 %vm4937_vm14, %v5868_v0  ;;  %vm4875_vm1 = vmpackc.low %vm931_vm10, %vm915_vm9  ;;  %vm901_vm9 = vcmp.eq.s32.totalorder %v6276_v17, %v6438_v30  ;;  %vm884_vm14 = vcmp.eq.s32.totalorder %v6278_v18, %v6454_v33 }
 0x111   : > { %4876 = vmatprep.subr.msk.bf16.mxu0 %vm4875_vm1, %v5868_v0  ;;  %vm4939_vm4 = vmpackc.low %vm933_vm13, %vm917_vm12  ;;  %vm898_vm12 = vcmp.eq.s32.totalorder %v6276_v17, %v6444_v31  ;;  %vm851_vm1 = vcmp.eq.s32.totalorder %v6302_v20, %v6430_v29 }
 0x112   : > { %4940 = vmatprep.subr.msk.bf16.mxu1 %vm4939_vm4, %v5868_v0  ;;  %vm4877_vm7 = vmpackc.low %vm930_vm0, %vm914_vm15  ;;  %vm900_vm15 = vcmp.eq.s32.totalorder %v6276_v17, %v6454_v33  ;;  %vm853_vm4 = vcmp.eq.s32.totalorder %v6302_v20, %v6438_v30 }
 0x113   : > { %4878 = vmatpush2.bf16.msk.msra.mxu0 %vm4877_vm7, %v5868_v0  ;;  %vm4941_vm10 = vmpackc.low %vm932_vm3, %vm916_vm2  ;;  %vm867_vm2 = vcmp.eq.s32.totalorder %v6300_v19, %v6430_v29  ;;  %vm850_vm7 = vcmp.eq.s32.totalorder %v6302_v20, %v6444_v31 }
 0x114   : > { %4942 = vmatpush2.bf16.msk.msra.mxu1 %vm4941_vm10, %v5868_v0  ;;  %vm4879_vm13 = vmpackc.low %vm899_vm6, %vm883_vm5  ;;  %vm869_vm5 = vcmp.eq.s32.totalorder %v6300_v19, %v6438_v30  ;;  %vm852_vm10 = vcmp.eq.s32.totalorder %v6302_v20, %v6454_v33 }
 0x115   : > { %4880 = vmatprep.subr.msk.bf16.mxu0 %vm4879_vm13, %v5868_v0  ;;  %vm4943_vm0 = vmpackc.low %vm901_vm9, %vm885_vm8  ;;  %vm866_vm8 = vcmp.eq.s32.totalorder %v6300_v19, %v6444_v31  ;;  %vm819_vm13 = vcmp.eq.s32.totalorder %v6326_v22, %v6430_v29 }
 0x116   : > { %4944 = vmatprep.subr.msk.bf16.mxu1 %vm4943_vm0, %v5868_v0  ;;  %vm4881_vm3 = vmpackc.low %vm898_vm12, %vm882_vm11  ;;  %vm868_vm11 = vcmp.eq.s32.totalorder %v6300_v19, %v6454_v33  ;;  %vm821_vm0 = vcmp.eq.s32.totalorder %v6326_v22, %v6438_v30 }
 0x117   : > { %4882 = vmatpush2.bf16.msk.msra.mxu0 %vm4881_vm3, %v5868_v0  ;;  %vm4945_vm6 = vmpackc.low %vm900_vm15, %vm884_vm14  ;;  %vm835_vm14 = vcmp.eq.s32.totalorder %v6324_v21, %v6430_v29  ;;  %vm818_vm3 = vcmp.eq.s32.totalorder %v6326_v22, %v6444_v31 }
 0x118   : > { %4946 = vmatpush2.bf16.msk.msra.mxu1 %vm4945_vm6, %v5868_v0  ;;  %vm4883_vm9 = vmpackc.low %vm867_vm2, %vm851_vm1  ;;  %vm837_vm1 = vcmp.eq.s32.totalorder %v6324_v21, %v6438_v30  ;;  %vm820_vm6 = vcmp.eq.s32.totalorder %v6326_v22, %v6454_v33 }
 0x119   : > { %4884 = vmatprep.subr.msk.bf16.mxu0 %vm4883_vm9, %v5868_v0  ;;  %vm4947_vm12 = vmpackc.low %vm869_vm5, %vm853_vm4  ;;  %vm834_vm4 = vcmp.eq.s32.totalorder %v6324_v21, %v6444_v31  ;;  %vm787_vm9 = vcmp.eq.s32.totalorder %v6350_v24, %v6430_v29 }
 0x11a   : > { %4948 = vmatprep.subr.msk.bf16.mxu1 %vm4947_vm12, %v5868_v0  ;;  %vm4885_vm15 = vmpackc.low %vm866_vm8, %vm850_vm7  ;;  %vm836_vm7 = vcmp.eq.s32.totalorder %v6324_v21, %v6454_v33  ;;  %vm789_vm12 = vcmp.eq.s32.totalorder %v6350_v24, %v6438_v30 }
 0x11b   : > { %4886 = vmatpush2.bf16.msk.msra.mxu0 %vm4885_vm15, %v5868_v0  ;;  %vm4949_vm2 = vmpackc.low %vm868_vm11, %vm852_vm10  ;;  %vm803_vm10 = vcmp.eq.s32.totalorder %v6348_v23, %v6430_v29  ;;  %vm786_vm15 = vcmp.eq.s32.totalorder %v6350_v24, %v6444_v31 }
 0x11c   : > { %4950 = vmatpush2.bf16.msk.msra.mxu1 %vm4949_vm2, %v5868_v0  ;;  %vm4887_vm5 = vmpackc.low %vm835_vm14, %vm819_vm13  ;;  %vm805_vm13 = vcmp.eq.s32.totalorder %v6348_v23, %v6438_v30  ;;  %vm788_vm2 = vcmp.eq.s32.totalorder %v6350_v24, %v6454_v33 }
 0x11d   : > { %4888 = vmatprep.subr.msk.bf16.mxu0 %vm4887_vm5, %v5868_v0  ;;  %vm4951_vm8 = vmpackc.low %vm837_vm1, %vm821_vm0  ;;  %vm802_vm0 = vcmp.eq.s32.totalorder %v6348_v23, %v6444_v31  ;;  %vm755_vm5 = vcmp.eq.s32.totalorder %v6374_v26, %v6430_v29 }
 0x11e   : > { %4952 = vmatprep.subr.msk.bf16.mxu1 %vm4951_vm8, %v5868_v0  ;;  %vm4889_vm11 = vmpackc.low %vm834_vm4, %vm818_vm3  ;;  %vm804_vm3 = vcmp.eq.s32.totalorder %v6348_v23, %v6454_v33  ;;  %vm757_vm8 = vcmp.eq.s32.totalorder %v6374_v26, %v6438_v30 }
 0x11f   : > { %4890 = vmatpush2.bf16.msk.msra.mxu0 %vm4889_vm11, %v5868_v0  ;;  %vm4953_vm14 = vmpackc.low %vm836_vm7, %vm820_vm6  ;;  %vm771_vm6 = vcmp.eq.s32.totalorder %v6372_v25, %v6430_v29  ;;  %vm754_vm11 = vcmp.eq.s32.totalorder %v6374_v26, %v6444_v31 }
 0x120   : > { %4954 = vmatpush2.bf16.msk.msra.mxu1 %vm4953_vm14, %v5868_v0  ;;  %vm4891_vm1 = vmpackc.low %vm803_vm10, %vm787_vm9  ;;  %vm773_vm9 = vcmp.eq.s32.totalorder %v6372_v25, %v6438_v30  ;;  %vm756_vm14 = vcmp.eq.s32.totalorder %v6374_v26, %v6454_v33 }
 0x121   : > { %4892 = vmatprep.subr.msk.bf16.mxu0 %vm4891_vm1, %v5868_v0  ;;  %vm4955_vm4 = vmpackc.low %vm805_vm13, %vm789_vm12  ;;  %vm770_vm12 = vcmp.eq.s32.totalorder %v6372_v25, %v6444_v31  ;;  %vm723_vm1 = vcmp.eq.s32.totalorder %v6398_v28, %v6430_v29 }
 0x122   : > { %4956 = vmatprep.subr.msk.bf16.mxu1 %vm4955_vm4, %v5868_v0  ;;  %vm4893_vm7 = vmpackc.low %vm802_vm0, %vm786_vm15  ;;  %vm772_vm15 = vcmp.eq.s32.totalorder %v6372_v25, %v6454_v33  ;;  %vm725_vm4 = vcmp.eq.s32.totalorder %v6398_v28, %v6438_v30 }
 0x123   : > { %4894 = vmatpush2.bf16.msk.msra.mxu0 %vm4893_vm7, %v5868_v0  ;;  %vm4957_vm10 = vmpackc.low %vm804_vm3, %vm788_vm2  ;;  %vm739_vm2 = vcmp.eq.s32.totalorder %v6396_v27, %v6430_v29  ;;  %vm722_vm7 = vcmp.eq.s32.totalorder %v6398_v28, %v6444_v31  ;;  %v5666_v29 = vld [vmem:[#allocation2 + $0x1b8] sm:$0xff]  }
 0x124   : > { %4958 = vmatpush2.bf16.msk.msra.mxu1 %vm4957_vm10, %v5868_v0  ;;  %vm4895_vm13 = vmpackc.low %vm771_vm6, %vm755_vm5  ;;  %vm741_vm5 = vcmp.eq.s32.totalorder %v6396_v27, %v6438_v30  ;;  %vm724_vm10 = vcmp.eq.s32.totalorder %v6398_v28, %v6454_v33  ;;  %v5667_v30 = vld [vmem:[#allocation2 + $0x170] sm:$0xff]  }
 0x125   : > { %4896 = vmatprep.subr.msk.bf16.mxu0 %vm4895_vm13, %v5868_v0  ;;  %vm4959_vm0 = vmpackc.low %vm773_vm9, %vm757_vm8  ;;  %vm738_vm8 = vcmp.eq.s32.totalorder %v6396_v27, %v6444_v31  ;;  %vm711_vm13 = vcmp.eq.s32.totalorder %v6052_v61, %v6770_v35 }
 0x126   : > { %4960 = vmatprep.subr.msk.bf16.mxu1 %vm4959_vm0, %v5868_v0  ;;  %vm4897_vm3 = vmpackc.low %vm770_vm12, %vm754_vm11  ;;  %vm740_vm11 = vcmp.eq.s32.totalorder %v6396_v27, %v6454_v33  ;;  %v5669_v33 = vld [vmem:[#allocation2 + $0x130] sm:$0xff]  }
 0x127   : > { %4898 = vmatpush2.bf16.msk.msra.mxu0 %vm4897_vm3, %v5868_v0  ;;  %vm4961_vm6 = vmpackc.low %vm772_vm15, %vm756_vm14  ;;  %vm713_vm15 = vcmp.eq.s32.totalorder %v6052_v61, %v6778_v36 }
 0x128   : > { %4962 = vmatpush2.bf16.msk.msra.mxu1 %vm4961_vm6, %v5868_v0  ;;  %vm4899_vm9 = vmpackc.low %vm739_vm2, %vm723_vm1  ;;  %vm695_vm1 = vcmp.eq.s32.totalorder %v6045_v58, %v6770_v35  ;;  %vm710_vm2 = vcmp.eq.s32.totalorder %v6052_v61, %v6784_v37 }
 0x129   : > { %4900 = vmatprep.subr.msk.bf16.mxu0 %vm4899_vm9, %v5868_v0  ;;  %vm4963_vm12 = vmpackc.low %vm741_vm5, %vm725_vm4  ;;  %vm697_vm4 = vcmp.eq.s32.totalorder %v6045_v58, %v6778_v36  ;;  %vm712_vm5 = vcmp.eq.s32.totalorder %v6052_v61, %v6790_v38  ;;  %vm679_vm9 = vcmp.eq.s32.totalorder %v6054_v62, %v6770_v35 }
 0x12a   : > { %4964 = vmatprep.subr.msk.bf16.mxu1 %vm4963_vm12, %v5868_v0  ;;  %vm4901_vm14 = vmpackc.low %vm738_vm8, %vm722_vm7  ;;  %vm694_vm7 = vcmp.eq.s32.totalorder %v6045_v58, %v6784_v37  ;;  %vm663_vm8 = vcmp.eq.s32.totalorder %v6047_v59, %v6770_v35  ;;  %vm665_vm12 = vcmp.eq.s32.totalorder %v6047_v59, %v6778_v36 }
 0x12b   : > { %4902 = vmatpush2.bf16.msk.msra.mxu0 %vm4901_vm14, %v5868_v0  ;;  %vm4965_vm0 = vmpackc.low %vm740_vm11, %vm724_vm10  ;;  %vm696_vm11 = vcmp.eq.s32.totalorder %v6045_v58, %v6790_v38 }
 0x12c   : > { %4966 = vmatpush2.bf16.msk.msra.mxu1 %vm4965_vm0, %v5868_v0  ;;  %vm4967_vm3 = vmpackc.low %vm711_vm13, %vm695_vm1  ;;  %vm681_vm13 = vcmp.eq.s32.totalorder %v6054_v62, %v6778_v36  ;;  %vm678_vm0 = vcmp.eq.s32.totalorder %v6054_v62, %v6784_v37 }
 0x12d   : > { %4968 = vmatprep.subr.msk.bf16.mxu0 %vm4967_vm3, %v5868_v0  ;;  %vm5031_vm6 = vmpackc.low %vm713_vm15, %vm697_vm4  ;;  %vm662_vm15 = vcmp.eq.s32.totalorder %v6047_v59, %v6784_v37  ;;  %vm680_vm3 = vcmp.eq.s32.totalorder %v6054_v62, %v6790_v38 }
 0x12e   : > { %5032 = vmatprep.subr.msk.bf16.mxu1 %vm5031_vm6, %v5868_v0  ;;  %2375 = vmatmul.mubr.bf16.vlgmr.msra.gmra.mxu0 %v6451_v32  ;;  %vm4969_vm10 = vmpackc.low %vm710_vm2, %vm694_vm7  ;;  %vm664_vm2 = vcmp.eq.s32.totalorder %v6047_v59, %v6790_v38  ;;  %vm647_vm6 = vcmp.eq.s32.totalorder %v6081_v1, %v6770_v35 }
 0x12f   : > { %2418 = vmatmul.mubr.bf16.vlgmr.msra.gmra.mxu1 %v6451_v32  ;;  %4970 = vmatpush1.bf16.msk.msra.mxu0 %vm4969_vm10, %v5868_v0  ;;  %vm5033_vm14 = vmpackc.low %vm712_vm5, %vm696_vm11  ;;  %vm631_vm5 = vcmp.eq.s32.totalorder %v6083_v2, %v6770_v35  ;;  %vm630_vm11 = vcmp.eq.s32.totalorder %v6083_v2, %v6784_v37 }
 0x130   : > { %5034 = vmatpush1.bf16.msk.msra.mxu1 %vm5033_vm14, %v5868_v0  ;;  %vm4971_vm1 = vmpackc.low %vm679_vm9, %vm663_vm8  ;;  %2460 = vmatprep.mubr.bf16.mxu0 %v6041_v57  ;;  %vm633_vm8 = vcmp.eq.s32.totalorder %v6083_v2, %v6778_v36  ;;  %vm649_vm9 = vcmp.eq.s32.totalorder %v6081_v1, %v6778_v36  ;;  %vm632_vm14 = vcmp.eq.s32.totalorder %v6083_v2, %v6790_v38 }
 0x131   : > { %4972 = vmatprep.subr.msk.bf16.mxu0 %vm4971_vm1, %v5868_v0  ;;  %vm5035_vm4 = vmpackc.low %vm681_vm13, %vm665_vm12  ;;  %2503 = vmatprep.mubr.bf16.mxu1 %v6041_v57  ;;  %vm646_vm12 = vcmp.eq.s32.totalorder %v6081_v1, %v6784_v37  ;;  %vm599_vm1 = vcmp.eq.s32.totalorder %v6110_v4, %v6770_v35 }
 0x132   : > { %5036 = vmatprep.subr.msk.bf16.mxu1 %vm5035_vm4, %v5868_v0  ;;  %vm4973_vm7 = vmpackc.low %vm678_vm0, %vm662_vm15  ;;  %vm648_vm15 = vcmp.eq.s32.totalorder %v6081_v1, %v6790_v38  ;;  %vm601_vm4 = vcmp.eq.s32.totalorder %v6110_v4, %v6778_v36 }
 0x133   : > { %4974 = vmatpush1.bf16.msk.msra.mxu0 %vm4973_vm7, %v5868_v0  ;;  %vm5037_vm10 = vmpackc.low %vm680_vm3, %vm664_vm2  ;;  %vm615_vm2 = vcmp.eq.s32.totalorder %v6108_v3, %v6770_v35  ;;  %vm598_vm7 = vcmp.eq.s32.totalorder %v6110_v4, %v6784_v37 }
 0x134   : > { %5038 = vmatpush1.bf16.msk.msra.mxu1 %vm5037_vm10, %v5868_v0  ;;  %vm4975_vm13 = vmpackc.low %vm647_vm6, %vm631_vm5  ;;  %vm617_vm5 = vcmp.eq.s32.totalorder %v6108_v3, %v6778_v36  ;;  %vm600_vm10 = vcmp.eq.s32.totalorder %v6110_v4, %v6790_v38 }
 0x135   : > { %4976 = vmatprep.subr.msk.bf16.mxu0 %vm4975_vm13, %v5868_v0  ;;  %vm5039_vm0 = vmpackc.low %vm649_vm9, %vm633_vm8  ;;  %vm614_vm8 = vcmp.eq.s32.totalorder %v6108_v3, %v6784_v37  ;;  %vm567_vm13 = vcmp.eq.s32.totalorder %v6134_v6, %v6770_v35 }
 0x136   : > { %5040 = vmatprep.subr.msk.bf16.mxu1 %vm5039_vm0, %v5868_v0  ;;  %vm4977_vm3 = vmpackc.low %vm646_vm12, %vm630_vm11  ;;  %vm616_vm11 = vcmp.eq.s32.totalorder %v6108_v3, %v6790_v38  ;;  %vm569_vm0 = vcmp.eq.s32.totalorder %v6134_v6, %v6778_v36 }
 0x137   : > { %4978 = vmatpush1.bf16.msk.msra.mxu0 %vm4977_vm3, %v5868_v0  ;;  %vm5041_vm6 = vmpackc.low %vm648_vm15, %vm632_vm14  ;;  %vm583_vm14 = vcmp.eq.s32.totalorder %v6132_v5, %v6770_v35  ;;  %vm566_vm3 = vcmp.eq.s32.totalorder %v6134_v6, %v6784_v37 }
 0x138   : > { %5042 = vmatpush1.bf16.msk.msra.mxu1 %vm5041_vm6, %v5868_v0  ;;  %vm4979_vm9 = vmpackc.low %vm615_vm2, %vm599_vm1  ;;  %vm585_vm1 = vcmp.eq.s32.totalorder %v6132_v5, %v6778_v36  ;;  %vm568_vm6 = vcmp.eq.s32.totalorder %v6134_v6, %v6790_v38 }
 0x139   : > { %4980 = vmatprep.subr.msk.bf16.mxu0 %vm4979_vm9, %v5868_v0  ;;  %vm5043_vm12 = vmpackc.low %vm617_vm5, %vm601_vm4  ;;  %vm582_vm4 = vcmp.eq.s32.totalorder %v6132_v5, %v6784_v37  ;;  %vm535_vm9 = vcmp.eq.s32.totalorder %v6158_v8, %v6770_v35 }
 0x13a   : > { %5044 = vmatprep.subr.msk.bf16.mxu1 %vm5043_vm12, %v5868_v0  ;;  %vm4981_vm15 = vmpackc.low %vm614_vm8, %vm598_vm7  ;;  %vm584_vm7 = vcmp.eq.s32.totalorder %v6132_v5, %v6790_v38  ;;  %vm537_vm12 = vcmp.eq.s32.totalorder %v6158_v8, %v6778_v36 }
 0x13b   : > { %4982 = vmatpush1.bf16.msk.msra.mxu0 %vm4981_vm15, %v5868_v0  ;;  %vm5045_vm2 = vmpackc.low %vm616_vm11, %vm600_vm10  ;;  %vm551_vm10 = vcmp.eq.s32.totalorder %v6156_v7, %v6770_v35  ;;  %vm534_vm15 = vcmp.eq.s32.totalorder %v6158_v8, %v6784_v37 }
 0x13c   : > { %5046 = vmatpush1.bf16.msk.msra.mxu1 %vm5045_vm2, %v5868_v0  ;;  %vm4983_vm5 = vmpackc.low %vm583_vm14, %vm567_vm13  ;;  %vm553_vm13 = vcmp.eq.s32.totalorder %v6156_v7, %v6778_v36  ;;  %vm536_vm2 = vcmp.eq.s32.totalorder %v6158_v8, %v6790_v38 }
 0x13d   : > { %4984 = vmatprep.subr.msk.bf16.mxu0 %vm4983_vm5, %v5868_v0  ;;  %vm5047_vm8 = vmpackc.low %vm585_vm1, %vm569_vm0  ;;  %vm550_vm0 = vcmp.eq.s32.totalorder %v6156_v7, %v6784_v37  ;;  %vm503_vm5 = vcmp.eq.s32.totalorder %v6182_v10, %v6770_v35 }
 0x13e   : > { %5048 = vmatprep.subr.msk.bf16.mxu1 %vm5047_vm8, %v5868_v0  ;;  %vm4985_vm11 = vmpackc.low %vm582_vm4, %vm566_vm3  ;;  %vm552_vm3 = vcmp.eq.s32.totalorder %v6156_v7, %v6790_v38  ;;  %vm505_vm8 = vcmp.eq.s32.totalorder %v6182_v10, %v6778_v36 }
 0x13f   : > { %4986 = vmatpush1.bf16.msk.msra.mxu0 %vm4985_vm11, %v5868_v0  ;;  %vm5049_vm14 = vmpackc.low %vm584_vm7, %vm568_vm6  ;;  %vm519_vm6 = vcmp.eq.s32.totalorder %v6180_v9, %v6770_v35  ;;  %vm502_vm11 = vcmp.eq.s32.totalorder %v6182_v10, %v6784_v37 }
 0x140   : > { %5050 = vmatpush1.bf16.msk.msra.mxu1 %vm5049_vm14, %v5868_v0  ;;  %vm4987_vm1 = vmpackc.low %vm551_vm10, %vm535_vm9  ;;  %vm521_vm9 = vcmp.eq.s32.totalorder %v6180_v9, %v6778_v36  ;;  %vm504_vm14 = vcmp.eq.s32.totalorder %v6182_v10, %v6790_v38 }
 0x141   : > { %4988 = vmatprep.subr.msk.bf16.mxu0 %vm4987_vm1, %v5868_v0  ;;  %vm5051_vm4 = vmpackc.low %vm553_vm13, %vm537_vm12  ;;  %vm518_vm12 = vcmp.eq.s32.totalorder %v6180_v9, %v6784_v37  ;;  %vm471_vm1 = vcmp.eq.s32.totalorder %v6206_v12, %v6770_v35 }
 0x142   : > { %5052 = vmatprep.subr.msk.bf16.mxu1 %vm5051_vm4, %v5868_v0  ;;  %vm4989_vm7 = vmpackc.low %vm550_vm0, %vm534_vm15  ;;  %vm520_vm15 = vcmp.eq.s32.totalorder %v6180_v9, %v6790_v38  ;;  %vm473_vm4 = vcmp.eq.s32.totalorder %v6206_v12, %v6778_v36 }
 0x143   : > { %4990 = vmatpush1.bf16.msk.msra.mxu0 %vm4989_vm7, %v5868_v0  ;;  %vm5053_vm10 = vmpackc.low %vm552_vm3, %vm536_vm2  ;;  %vm487_vm2 = vcmp.eq.s32.totalorder %v6204_v11, %v6770_v35  ;;  %vm470_vm7 = vcmp.eq.s32.totalorder %v6206_v12, %v6784_v37 }
 0x144   : > { %5054 = vmatpush1.bf16.msk.msra.mxu1 %vm5053_vm10, %v5868_v0  ;;  %vm4991_vm13 = vmpackc.low %vm519_vm6, %vm503_vm5  ;;  %vm489_vm5 = vcmp.eq.s32.totalorder %v6204_v11, %v6778_v36  ;;  %vm472_vm10 = vcmp.eq.s32.totalorder %v6206_v12, %v6790_v38 }
 0x145   : > { %4992 = vmatprep.subr.msk.bf16.mxu0 %vm4991_vm13, %v5868_v0  ;;  %vm5055_vm0 = vmpackc.low %vm521_vm9, %vm505_vm8  ;;  %vm486_vm8 = vcmp.eq.s32.totalorder %v6204_v11, %v6784_v37  ;;  %vm951_vm13 = vcmp.eq.s32.totalorder %v6230_v14, %v6770_v35 }
 0x146   : > { %5056 = vmatprep.subr.msk.bf16.mxu1 %vm5055_vm0, %v5868_v0  ;;  %vm4993_vm3 = vmpackc.low %vm518_vm12, %vm502_vm11  ;;  %vm488_vm11 = vcmp.eq.s32.totalorder %v6204_v11, %v6790_v38  ;;  %vm953_vm0 = vcmp.eq.s32.totalorder %v6230_v14, %v6778_v36 }
 0x147   : > { %4994 = vmatpush1.bf16.msk.msra.mxu0 %vm4993_vm3, %v5868_v0  ;;  %vm5057_vm6 = vmpackc.low %vm520_vm15, %vm504_vm14  ;;  %vm967_vm14 = vcmp.eq.s32.totalorder %v6228_v13, %v6770_v35  ;;  %vm950_vm3 = vcmp.eq.s32.totalorder %v6230_v14, %v6784_v37 }
 0x148   : > { %5058 = vmatpush1.bf16.msk.msra.mxu1 %vm5057_vm6, %v5868_v0  ;;  %vm4995_vm9 = vmpackc.low %vm487_vm2, %vm471_vm1  ;;  %vm969_vm1 = vcmp.eq.s32.totalorder %v6228_v13, %v6778_v36  ;;  %vm952_vm6 = vcmp.eq.s32.totalorder %v6230_v14, %v6790_v38 }
 0x149   : > { %4996 = vmatprep.subr.msk.bf16.mxu0 %vm4995_vm9, %v5868_v0  ;;  %vm5059_vm12 = vmpackc.low %vm489_vm5, %vm473_vm4  ;;  %vm966_vm4 = vcmp.eq.s32.totalorder %v6228_v13, %v6784_v37  ;;  %vm919_vm9 = vcmp.eq.s32.totalorder %v6254_v16, %v6770_v35 }
 0x14a   : > { %5060 = vmatprep.subr.msk.bf16.mxu1 %vm5059_vm12, %v5868_v0  ;;  %vm4997_vm15 = vmpackc.low %vm486_vm8, %vm470_vm7  ;;  %vm968_vm7 = vcmp.eq.s32.totalorder %v6228_v13, %v6790_v38  ;;  %vm921_vm12 = vcmp.eq.s32.totalorder %v6254_v16, %v6778_v36 }
 0x14b   : > { %4998 = vmatpush1.bf16.msk.msra.mxu0 %vm4997_vm15, %v5868_v0  ;;  %vm5061_vm2 = vmpackc.low %vm488_vm11, %vm472_vm10  ;;  %vm935_vm10 = vcmp.eq.s32.totalorder %v6252_v15, %v6770_v35  ;;  %vm918_vm15 = vcmp.eq.s32.totalorder %v6254_v16, %v6784_v37 }
 0x14c   : > { %5062 = vmatpush1.bf16.msk.msra.mxu1 %vm5061_vm2, %v5868_v0  ;;  %vm4999_vm5 = vmpackc.low %vm967_vm14, %vm951_vm13  ;;  %vm937_vm13 = vcmp.eq.s32.totalorder %v6252_v15, %v6778_v36  ;;  %vm920_vm2 = vcmp.eq.s32.totalorder %v6254_v16, %v6790_v38 }
 0x14d   : > { %5000 = vmatprep.subr.msk.bf16.mxu0 %vm4999_vm5, %v5868_v0  ;;  %vm5063_vm8 = vmpackc.low %vm969_vm1, %vm953_vm0  ;;  %vm934_vm0 = vcmp.eq.s32.totalorder %v6252_v15, %v6784_v37  ;;  %vm887_vm5 = vcmp.eq.s32.totalorder %v6278_v18, %v6770_v35 }
 0x14e   : > { %5064 = vmatprep.subr.msk.bf16.mxu1 %vm5063_vm8, %v5868_v0  ;;  %vm5001_vm11 = vmpackc.low %vm966_vm4, %vm950_vm3  ;;  %vm936_vm3 = vcmp.eq.s32.totalorder %v6252_v15, %v6790_v38  ;;  %vm889_vm8 = vcmp.eq.s32.totalorder %v6278_v18, %v6778_v36 }
 0x14f   : > { %5002 = vmatpush2.bf16.msk.msra.mxu0 %vm5001_vm11, %v5868_v0  ;;  %vm5065_vm14 = vmpackc.low %vm968_vm7, %vm952_vm6  ;;  %vm903_vm6 = vcmp.eq.s32.totalorder %v6276_v17, %v6770_v35  ;;  %vm886_vm11 = vcmp.eq.s32.totalorder %v6278_v18, %v6784_v37 }
 0x150   : > { %5066 = vmatpush2.bf16.msk.msra.mxu1 %vm5065_vm14, %v5868_v0  ;;  %vm5003_vm1 = vmpackc.low %vm935_vm10, %vm919_vm9  ;;  %vm905_vm9 = vcmp.eq.s32.totalorder %v6276_v17, %v6778_v36  ;;  %vm888_vm14 = vcmp.eq.s32.totalorder %v6278_v18, %v6790_v38 }
 0x151   : > { %5004 = vmatprep.subr.msk.bf16.mxu0 %vm5003_vm1, %v5868_v0  ;;  %vm5067_vm4 = vmpackc.low %vm937_vm13, %vm921_vm12  ;;  %vm902_vm12 = vcmp.eq.s32.totalorder %v6276_v17, %v6784_v37  ;;  %vm855_vm1 = vcmp.eq.s32.totalorder %v6302_v20, %v6770_v35 }
 0x152   : > { %5068 = vmatprep.subr.msk.bf16.mxu1 %vm5067_vm4, %v5868_v0  ;;  %vm5005_vm7 = vmpackc.low %vm934_vm0, %vm918_vm15  ;;  %vm904_vm15 = vcmp.eq.s32.totalorder %v6276_v17, %v6790_v38  ;;  %vm857_vm4 = vcmp.eq.s32.totalorder %v6302_v20, %v6778_v36 }
 0x153   : > { %5006 = vmatpush2.bf16.msk.msra.mxu0 %vm5005_vm7, %v5868_v0  ;;  %vm5069_vm10 = vmpackc.low %vm936_vm3, %vm920_vm2  ;;  %vm871_vm2 = vcmp.eq.s32.totalorder %v6300_v19, %v6770_v35  ;;  %vm854_vm7 = vcmp.eq.s32.totalorder %v6302_v20, %v6784_v37 }
 0x154   : > { %5070 = vmatpush2.bf16.msk.msra.mxu1 %vm5069_vm10, %v5868_v0  ;;  %vm5007_vm13 = vmpackc.low %vm903_vm6, %vm887_vm5  ;;  %vm873_vm5 = vcmp.eq.s32.totalorder %v6300_v19, %v6778_v36  ;;  %vm856_vm10 = vcmp.eq.s32.totalorder %v6302_v20, %v6790_v38 }
 0x155   : > { %5008 = vmatprep.subr.msk.bf16.mxu0 %vm5007_vm13, %v5868_v0  ;;  %vm5071_vm0 = vmpackc.low %vm905_vm9, %vm889_vm8  ;;  %vm870_vm8 = vcmp.eq.s32.totalorder %v6300_v19, %v6784_v37  ;;  %vm823_vm13 = vcmp.eq.s32.totalorder %v6326_v22, %v6770_v35 }
 0x156   : > { %5072 = vmatprep.subr.msk.bf16.mxu1 %vm5071_vm0, %v5868_v0  ;;  %vm5009_vm3 = vmpackc.low %vm902_vm12, %vm886_vm11  ;;  %vm872_vm11 = vcmp.eq.s32.totalorder %v6300_v19, %v6790_v38  ;;  %vm825_vm0 = vcmp.eq.s32.totalorder %v6326_v22, %v6778_v36 }
 0x157   : > { %5010 = vmatpush2.bf16.msk.msra.mxu0 %vm5009_vm3, %v5868_v0  ;;  %vm5073_vm6 = vmpackc.low %vm904_vm15, %vm888_vm14  ;;  %vm839_vm14 = vcmp.eq.s32.totalorder %v6324_v21, %v6770_v35  ;;  %vm822_vm3 = vcmp.eq.s32.totalorder %v6326_v22, %v6784_v37 }
 0x158   : > { %5074 = vmatpush2.bf16.msk.msra.mxu1 %vm5073_vm6, %v5868_v0  ;;  %vm5011_vm9 = vmpackc.low %vm871_vm2, %vm855_vm1  ;;  %vm841_vm1 = vcmp.eq.s32.totalorder %v6324_v21, %v6778_v36  ;;  %vm824_vm6 = vcmp.eq.s32.totalorder %v6326_v22, %v6790_v38 }
 0x159   : > { %5012 = vmatprep.subr.msk.bf16.mxu0 %vm5011_vm9, %v5868_v0  ;;  %vm5075_vm12 = vmpackc.low %vm873_vm5, %vm857_vm4  ;;  %vm838_vm4 = vcmp.eq.s32.totalorder %v6324_v21, %v6784_v37  ;;  %vm791_vm9 = vcmp.eq.s32.totalorder %v6350_v24, %v6770_v35 }
 0x15a   : > { %5076 = vmatprep.subr.msk.bf16.mxu1 %vm5075_vm12, %v5868_v0  ;;  %vm5013_vm15 = vmpackc.low %vm870_vm8, %vm854_vm7  ;;  %vm840_vm7 = vcmp.eq.s32.totalorder %v6324_v21, %v6790_v38  ;;  %vm793_vm12 = vcmp.eq.s32.totalorder %v6350_v24, %v6778_v36 }
 0x15b   : > { %5014 = vmatpush2.bf16.msk.msra.mxu0 %vm5013_vm15, %v5868_v0  ;;  %vm5077_vm2 = vmpackc.low %vm872_vm11, %vm856_vm10  ;;  %vm807_vm10 = vcmp.eq.s32.totalorder %v6348_v23, %v6770_v35  ;;  %vm790_vm15 = vcmp.eq.s32.totalorder %v6350_v24, %v6784_v37 }
 0x15c   : > { %5078 = vmatpush2.bf16.msk.msra.mxu1 %vm5077_vm2, %v5868_v0  ;;  %vm5015_vm5 = vmpackc.low %vm839_vm14, %vm823_vm13  ;;  %vm809_vm13 = vcmp.eq.s32.totalorder %v6348_v23, %v6778_v36  ;;  %vm792_vm2 = vcmp.eq.s32.totalorder %v6350_v24, %v6790_v38 }
 0x15d   : > { %5016 = vmatprep.subr.msk.bf16.mxu0 %vm5015_vm5, %v5868_v0  ;;  %vm5079_vm8 = vmpackc.low %vm841_vm1, %vm825_vm0  ;;  %vm806_vm0 = vcmp.eq.s32.totalorder %v6348_v23, %v6784_v37  ;;  %vm759_vm5 = vcmp.eq.s32.totalorder %v6374_v26, %v6770_v35 }
 0x15e   : > { %5080 = vmatprep.subr.msk.bf16.mxu1 %vm5079_vm8, %v5868_v0  ;;  %vm5017_vm11 = vmpackc.low %vm838_vm4, %vm822_vm3  ;;  %vm808_vm3 = vcmp.eq.s32.totalorder %v6348_v23, %v6790_v38  ;;  %vm761_vm8 = vcmp.eq.s32.totalorder %v6374_v26, %v6778_v36 }
 0x15f   : > { %5018 = vmatpush2.bf16.msk.msra.mxu0 %vm5017_vm11, %v5868_v0  ;;  %vm5081_vm14 = vmpackc.low %vm840_vm7, %vm824_vm6  ;;  %vm775_vm6 = vcmp.eq.s32.totalorder %v6372_v25, %v6770_v35  ;;  %vm758_vm11 = vcmp.eq.s32.totalorder %v6374_v26, %v6784_v37 }
 0x160   : > { %5082 = vmatpush2.bf16.msk.msra.mxu1 %vm5081_vm14, %v5868_v0  ;;  %vm5019_vm1 = vmpackc.low %vm807_vm10, %vm791_vm9  ;;  %vm777_vm9 = vcmp.eq.s32.totalorder %v6372_v25, %v6778_v36  ;;  %vm760_vm14 = vcmp.eq.s32.totalorder %v6374_v26, %v6790_v38 }
 0x161   : > { %5020 = vmatprep.subr.msk.bf16.mxu0 %vm5019_vm1, %v5868_v0  ;;  %vm5083_vm4 = vmpackc.low %vm809_vm13, %vm793_vm12  ;;  %vm774_vm12 = vcmp.eq.s32.totalorder %v6372_v25, %v6784_v37  ;;  %vm727_vm1 = vcmp.eq.s32.totalorder %v6398_v28, %v6770_v35 }
 0x162   : > { %5084 = vmatprep.subr.msk.bf16.mxu1 %vm5083_vm4, %v5868_v0  ;;  %vm5021_vm7 = vmpackc.low %vm806_vm0, %vm790_vm15  ;;  %vm776_vm15 = vcmp.eq.s32.totalorder %v6372_v25, %v6790_v38  ;;  %vm729_vm4 = vcmp.eq.s32.totalorder %v6398_v28, %v6778_v36 }
 0x163   : > { %5022 = vmatpush2.bf16.msk.msra.mxu0 %vm5021_vm7, %v5868_v0  ;;  %vm5085_vm10 = vmpackc.low %vm808_vm3, %vm792_vm2  ;;  %vm743_vm2 = vcmp.eq.s32.totalorder %v6396_v27, %v6770_v35  ;;  %vm726_vm7 = vcmp.eq.s32.totalorder %v6398_v28, %v6784_v37  ;;  %v5670_v35 = vld [vmem:[#allocation2 + $0x1b0] sm:$0xff]  }
 0x164   : > { %5086 = vmatpush2.bf16.msk.msra.mxu1 %vm5085_vm10, %v5868_v0  ;;  %vm5023_vm13 = vmpackc.low %vm775_vm6, %vm759_vm5  ;;  %vm745_vm5 = vcmp.eq.s32.totalorder %v6396_v27, %v6778_v36  ;;  %vm728_vm10 = vcmp.eq.s32.totalorder %v6398_v28, %v6790_v38  ;;  %v5671_v36 = vld [vmem:[#allocation2 + $0x168] sm:$0xff]  }
 0x165   : > { %5024 = vmatprep.subr.msk.bf16.mxu0 %vm5023_vm13, %v5868_v0  ;;  %vm5087_vm0 = vmpackc.low %vm777_vm9, %vm761_vm8  ;;  %vm742_vm8 = vcmp.eq.s32.totalorder %v6396_v27, %v6784_v37  ;;  %vm715_vm13 = vcmp.eq.s32.totalorder %v6052_v61, %v7106_v39  ;;  %v5672_v37 = vld [vmem:[#allocation2 + $0x1e8] sm:$0xff]  }
 0x166   : > { %5088 = vmatprep.subr.msk.bf16.mxu1 %vm5087_vm0, %v5868_v0  ;;  %vm5025_vm3 = vmpackc.low %vm774_vm12, %vm758_vm11  ;;  %vm744_vm11 = vcmp.eq.s32.totalorder %v6396_v27, %v6790_v38  ;;  %v5673_v38 = vld [vmem:[#allocation2 + $0x128] sm:$0xff]  }
 0x167   : > { %5026 = vmatpush2.bf16.msk.msra.mxu0 %vm5025_vm3, %v5868_v0  ;;  %vm5089_vm6 = vmpackc.low %vm776_vm15, %vm760_vm14  ;;  %vm717_vm15 = vcmp.eq.s32.totalorder %v6052_v61, %v7114_v40 }
 0x168   : > { %5090 = vmatpush2.bf16.msk.msra.mxu1 %vm5089_vm6, %v5868_v0  ;;  %vm5027_vm9 = vmpackc.low %vm743_vm2, %vm727_vm1  ;;  %vm699_vm1 = vcmp.eq.s32.totalorder %v6045_v58, %v7106_v39  ;;  %vm714_vm2 = vcmp.eq.s32.totalorder %v6052_v61, %v7120_v41 }
 0x169   : > { %5028 = vmatprep.subr.msk.bf16.mxu0 %vm5027_vm9, %v5868_v0  ;;  %vm5091_vm12 = vmpackc.low %vm745_vm5, %vm729_vm4  ;;  %vm701_vm4 = vcmp.eq.s32.totalorder %v6045_v58, %v7114_v40  ;;  %vm716_vm5 = vcmp.eq.s32.totalorder %v6052_v61, %v7126_v42  ;;  %vm683_vm9 = vcmp.eq.s32.totalorder %v6054_v62, %v7106_v39 }
 0x16a   : > { %5092 = vmatprep.subr.msk.bf16.mxu1 %vm5091_vm12, %v5868_v0  ;;  %vm5029_vm14 = vmpackc.low %vm742_vm8, %vm726_vm7  ;;  %vm698_vm7 = vcmp.eq.s32.totalorder %v6045_v58, %v7120_v41  ;;  %vm667_vm8 = vcmp.eq.s32.totalorder %v6047_v59, %v7106_v39  ;;  %vm669_vm12 = vcmp.eq.s32.totalorder %v6047_v59, %v7114_v40 }
 0x16b   : > { %5030 = vmatpush2.bf16.msk.msra.mxu0 %vm5029_vm14, %v5868_v0  ;;  %vm5093_vm0 = vmpackc.low %vm744_vm11, %vm728_vm10  ;;  %vm700_vm11 = vcmp.eq.s32.totalorder %v6045_v58, %v7126_v42  ;;  %v5639_v58 = vld [vmem:[#allocation2 + $0x68] sm:$0xff]  }
 0x16c   : > { %5094 = vmatpush2.bf16.msk.msra.mxu1 %vm5093_vm0, %v5868_v0  ;;  %vm5095_vm3 = vmpackc.low %vm715_vm13, %vm699_vm1  ;;  %vm685_vm13 = vcmp.eq.s32.totalorder %v6054_v62, %v7114_v40  ;;  %vm682_vm0 = vcmp.eq.s32.totalorder %v6054_v62, %v7120_v41 }
 0x16d   : > { %5096 = vmatprep.subr.msk.bf16.mxu0 %vm5095_vm3, %v5868_v0  ;;  %vm5159_vm6 = vmpackc.low %vm717_vm15, %vm701_vm4  ;;  %vm666_vm15 = vcmp.eq.s32.totalorder %v6047_v59, %v7120_v41  ;;  %vm684_vm3 = vcmp.eq.s32.totalorder %v6054_v62, %v7126_v42 }
 0x16e   : > { %5160 = vmatprep.subr.msk.bf16.mxu1 %vm5159_vm6, %v5868_v0  ;;  %2461 = vmatmul.mubr.bf16.vlgmr.msra.gmra.mxu0 %v6451_v32  ;;  %vm5097_vm10 = vmpackc.low %vm714_vm2, %vm698_vm7  ;;  %vm668_vm2 = vcmp.eq.s32.totalorder %v6047_v59, %v7126_v42  ;;  %vm651_vm6 = vcmp.eq.s32.totalorder %v6081_v1, %v7106_v39 }
 0x16f   : > { %2504 = vmatmul.mubr.bf16.vlgmr.msra.gmra.mxu1 %v6451_v32  ;;  %5098 = vmatpush1.bf16.msk.msra.mxu0 %vm5097_vm10, %v5868_v0  ;;  %vm5161_vm14 = vmpackc.low %vm716_vm5, %vm700_vm11  ;;  %vm635_vm5 = vcmp.eq.s32.totalorder %v6083_v2, %v7106_v39  ;;  %vm634_vm11 = vcmp.eq.s32.totalorder %v6083_v2, %v7120_v41 }
 0x170   : > { %5162 = vmatpush1.bf16.msk.msra.mxu1 %vm5161_vm14, %v5868_v0  ;;  %vm5099_vm1 = vmpackc.low %vm683_vm9, %vm667_vm8  ;;  %2546 = vmatprep.mubr.bf16.mxu0 %v6041_v57  ;;  %vm637_vm8 = vcmp.eq.s32.totalorder %v6083_v2, %v7114_v40  ;;  %vm653_vm9 = vcmp.eq.s32.totalorder %v6081_v1, %v7114_v40  ;;  %vm636_vm14 = vcmp.eq.s32.totalorder %v6083_v2, %v7126_v42 }
 0x171   : > { %5100 = vmatprep.subr.msk.bf16.mxu0 %vm5099_vm1, %v5868_v0  ;;  %vm5163_vm4 = vmpackc.low %vm685_vm13, %vm669_vm12  ;;  %2589 = vmatprep.mubr.bf16.mxu1 %v6041_v57  ;;  %vm650_vm12 = vcmp.eq.s32.totalorder %v6081_v1, %v7120_v41  ;;  %vm603_vm1 = vcmp.eq.s32.totalorder %v6110_v4, %v7106_v39  ;;  %v5638_v57 = vld [vmem:[#allocation2 + $0xb0] sm:$0xff]  }
 0x172   : > { %5164 = vmatprep.subr.msk.bf16.mxu1 %vm5163_vm4, %v5868_v0  ;;  %vm5101_vm7 = vmpackc.low %vm682_vm0, %vm666_vm15  ;;  %vm652_vm15 = vcmp.eq.s32.totalorder %v6081_v1, %v7126_v42  ;;  %vm605_vm4 = vcmp.eq.s32.totalorder %v6110_v4, %v7114_v40  ;;  %v5642_v1 = vld [vmem:[#allocation2 + $0xa8] sm:$0xff]  }
 0x173   : > { %5102 = vmatpush1.bf16.msk.msra.mxu0 %vm5101_vm7, %v5868_v0  ;;  %vm5165_vm10 = vmpackc.low %vm684_vm3, %vm668_vm2  ;;  %vm619_vm2 = vcmp.eq.s32.totalorder %v6108_v3, %v7106_v39  ;;  %vm602_vm7 = vcmp.eq.s32.totalorder %v6110_v4, %v7120_v41 }
 0x174   : > { %5166 = vmatpush1.bf16.msk.msra.mxu1 %vm5165_vm10, %v5868_v0  ;;  %vm5103_vm13 = vmpackc.low %vm651_vm6, %vm635_vm5  ;;  %vm621_vm5 = vcmp.eq.s32.totalorder %v6108_v3, %v7114_v40  ;;  %vm604_vm10 = vcmp.eq.s32.totalorder %v6110_v4, %v7126_v42  ;;  %v5643_v4 = vld [vmem:[#allocation2 + $0x60] sm:$0xff]  }
 0x175   : > { %5104 = vmatprep.subr.msk.bf16.mxu0 %vm5103_vm13, %v5868_v0  ;;  %vm5167_vm0 = vmpackc.low %vm653_vm9, %vm637_vm8  ;;  %vm618_vm8 = vcmp.eq.s32.totalorder %v6108_v3, %v7120_v41  ;;  %vm571_vm13 = vcmp.eq.s32.totalorder %v6134_v6, %v7106_v39 }
 0x176   : > { %5168 = vmatprep.subr.msk.bf16.mxu1 %vm5167_vm0, %v5868_v0  ;;  %vm5105_vm3 = vmpackc.low %vm650_vm12, %vm634_vm11  ;;  %vm620_vm11 = vcmp.eq.s32.totalorder %v6108_v3, %v7126_v42  ;;  %vm573_vm0 = vcmp.eq.s32.totalorder %v6134_v6, %v7114_v40 }
 0x177   : > { %5106 = vmatpush1.bf16.msk.msra.mxu0 %vm5105_vm3, %v5868_v0  ;;  %vm5169_vm6 = vmpackc.low %vm652_vm15, %vm636_vm14  ;;  %vm587_vm14 = vcmp.eq.s32.totalorder %v6132_v5, %v7106_v39  ;;  %vm570_vm3 = vcmp.eq.s32.totalorder %v6134_v6, %v7120_v41 }
 0x178   : > { %5170 = vmatpush1.bf16.msk.msra.mxu1 %vm5169_vm6, %v5868_v0  ;;  %vm5107_vm9 = vmpackc.low %vm619_vm2, %vm603_vm1  ;;  %vm589_vm1 = vcmp.eq.s32.totalorder %v6132_v5, %v7114_v40  ;;  %vm572_vm6 = vcmp.eq.s32.totalorder %v6134_v6, %v7126_v42 }
 0x179   : > { %5108 = vmatprep.subr.msk.bf16.mxu0 %vm5107_vm9, %v5868_v0  ;;  %vm5171_vm12 = vmpackc.low %vm621_vm5, %vm605_vm4  ;;  %vm586_vm4 = vcmp.eq.s32.totalorder %v6132_v5, %v7120_v41  ;;  %vm539_vm9 = vcmp.eq.s32.totalorder %v6158_v8, %v7106_v39 }
 0x17a   : > { %5172 = vmatprep.subr.msk.bf16.mxu1 %vm5171_vm12, %v5868_v0  ;;  %vm5109_vm15 = vmpackc.low %vm618_vm8, %vm602_vm7  ;;  %vm588_vm7 = vcmp.eq.s32.totalorder %v6132_v5, %v7126_v42  ;;  %vm541_vm12 = vcmp.eq.s32.totalorder %v6158_v8, %v7114_v40  ;;  %v5644_v5 = vld [vmem:[#allocation2 + $0xe0] sm:$0xff]  }
 0x17b   : > { %5110 = vmatpush1.bf16.msk.msra.mxu0 %vm5109_vm15, %v5868_v0  ;;  %vm5173_vm2 = vmpackc.low %vm620_vm11, %vm604_vm10  ;;  %vm555_vm10 = vcmp.eq.s32.totalorder %v6156_v7, %v7106_v39  ;;  %vm538_vm15 = vcmp.eq.s32.totalorder %v6158_v8, %v7120_v41 }
 0x17c   : > { %5174 = vmatpush1.bf16.msk.msra.mxu1 %vm5173_vm2, %v5868_v0  ;;  %vm5111_vm5 = vmpackc.low %vm587_vm14, %vm571_vm13  ;;  %vm557_vm13 = vcmp.eq.s32.totalorder %v6156_v7, %v7114_v40  ;;  %vm540_vm2 = vcmp.eq.s32.totalorder %v6158_v8, %v7126_v42  ;;  %v5646_v8 = vld [vmem:[#allocation2 + $0xa0] sm:$0xff]  }
 0x17d   : > { %5112 = vmatprep.subr.msk.bf16.mxu0 %vm5111_vm5, %v5868_v0  ;;  %vm5175_vm8 = vmpackc.low %vm589_vm1, %vm573_vm0  ;;  %vm554_vm0 = vcmp.eq.s32.totalorder %v6156_v7, %v7120_v41  ;;  %vm507_vm5 = vcmp.eq.s32.totalorder %v6182_v10, %v7106_v39 }
 0x17e   : > { %5176 = vmatprep.subr.msk.bf16.mxu1 %vm5175_vm8, %v5868_v0  ;;  %vm5113_vm11 = vmpackc.low %vm586_vm4, %vm570_vm3  ;;  %vm556_vm3 = vcmp.eq.s32.totalorder %v6156_v7, %v7126_v42  ;;  %vm509_vm8 = vcmp.eq.s32.totalorder %v6182_v10, %v7114_v40  ;;  %v5645_v7 = vld [vmem:[#allocation2 + $0x20] sm:$0xff]  }
 0x17f   : > { %5114 = vmatpush1.bf16.msk.msra.mxu0 %vm5113_vm11, %v5868_v0  ;;  %vm5177_vm14 = vmpackc.low %vm588_vm7, %vm572_vm6  ;;  %vm523_vm6 = vcmp.eq.s32.totalorder %v6180_v9, %v7106_v39  ;;  %vm506_vm11 = vcmp.eq.s32.totalorder %v6182_v10, %v7120_v41 }
 0x180   : > { %5178 = vmatpush1.bf16.msk.msra.mxu1 %vm5177_vm14, %v5868_v0  ;;  %vm5115_vm1 = vmpackc.low %vm555_vm10, %vm539_vm9  ;;  %vm525_vm9 = vcmp.eq.s32.totalorder %v6180_v9, %v7114_v40  ;;  %vm508_vm14 = vcmp.eq.s32.totalorder %v6182_v10, %v7126_v42  ;;  %v5648_v10 = vld [vmem:[#allocation2 + $0xd8] sm:$0xff]  }
 0x181   : > { %5116 = vmatprep.subr.msk.bf16.mxu0 %vm5115_vm1, %v5868_v0  ;;  %vm5179_vm4 = vmpackc.low %vm557_vm13, %vm541_vm12  ;;  %vm522_vm12 = vcmp.eq.s32.totalorder %v6180_v9, %v7120_v41  ;;  %vm475_vm1 = vcmp.eq.s32.totalorder %v6206_v12, %v7106_v39 }
 0x182   : > { %5180 = vmatprep.subr.msk.bf16.mxu1 %vm5179_vm4, %v5868_v0  ;;  %vm5117_vm7 = vmpackc.low %vm554_vm0, %vm538_vm15  ;;  %vm524_vm15 = vcmp.eq.s32.totalorder %v6180_v9, %v7126_v42  ;;  %vm477_vm4 = vcmp.eq.s32.totalorder %v6206_v12, %v7114_v40  ;;  %v5647_v9 = vld [vmem:[#allocation2 + $0x58] sm:$0xff]  }
 0x183   : > { %5118 = vmatpush1.bf16.msk.msra.mxu0 %vm5117_vm7, %v5868_v0  ;;  %vm5181_vm10 = vmpackc.low %vm556_vm3, %vm540_vm2  ;;  %vm491_vm2 = vcmp.eq.s32.totalorder %v6204_v11, %v7106_v39  ;;  %vm474_vm7 = vcmp.eq.s32.totalorder %v6206_v12, %v7120_v41 }
 0x184   : > { %5182 = vmatpush1.bf16.msk.msra.mxu1 %vm5181_vm10, %v5868_v0  ;;  %vm5119_vm13 = vmpackc.low %vm523_vm6, %vm507_vm5  ;;  %vm493_vm5 = vcmp.eq.s32.totalorder %v6204_v11, %v7114_v40  ;;  %vm476_vm10 = vcmp.eq.s32.totalorder %v6206_v12, %v7126_v42  ;;  %v5650_v12 = vld [vmem:[#allocation2 + $0x98] sm:$0xff]  }
 0x185   : > { %5120 = vmatprep.subr.msk.bf16.mxu0 %vm5119_vm13, %v5868_v0  ;;  %vm5183_vm0 = vmpackc.low %vm525_vm9, %vm509_vm8  ;;  %vm490_vm8 = vcmp.eq.s32.totalorder %v6204_v11, %v7120_v41  ;;  %vm955_vm13 = vcmp.eq.s32.totalorder %v6230_v14, %v7106_v39 }
 0x186   : > { %5184 = vmatprep.subr.msk.bf16.mxu1 %vm5183_vm0, %v5868_v0  ;;  %vm5121_vm3 = vmpackc.low %vm522_vm12, %vm506_vm11  ;;  %vm492_vm11 = vcmp.eq.s32.totalorder %v6204_v11, %v7126_v42  ;;  %vm957_vm0 = vcmp.eq.s32.totalorder %v6230_v14, %v7114_v40  ;;  %v5649_v11 = vld [vmem:[#allocation2 + $0x18] sm:$0xff]  }
 0x187   : > { %5122 = vmatpush1.bf16.msk.msra.mxu0 %vm5121_vm3, %v5868_v0  ;;  %vm5185_vm6 = vmpackc.low %vm524_vm15, %vm508_vm14  ;;  %vm971_vm14 = vcmp.eq.s32.totalorder %v6228_v13, %v7106_v39  ;;  %vm954_vm3 = vcmp.eq.s32.totalorder %v6230_v14, %v7120_v41 }
 0x188   : > { %5186 = vmatpush1.bf16.msk.msra.mxu1 %vm5185_vm6, %v5868_v0  ;;  %vm5123_vm9 = vmpackc.low %vm491_vm2, %vm475_vm1  ;;  %vm973_vm1 = vcmp.eq.s32.totalorder %v6228_v13, %v7114_v40  ;;  %vm956_vm6 = vcmp.eq.s32.totalorder %v6230_v14, %v7126_v42  ;;  %v5652_v14 = vld [vmem:[#allocation2 + $0xd0] sm:$0xff]  }
 0x189   : > { %5124 = vmatprep.subr.msk.bf16.mxu0 %vm5123_vm9, %v5868_v0  ;;  %vm5187_vm12 = vmpackc.low %vm493_vm5, %vm477_vm4  ;;  %vm970_vm4 = vcmp.eq.s32.totalorder %v6228_v13, %v7120_v41  ;;  %vm923_vm9 = vcmp.eq.s32.totalorder %v6254_v16, %v7106_v39 }
 0x18a   : > { %5188 = vmatprep.subr.msk.bf16.mxu1 %vm5187_vm12, %v5868_v0  ;;  %vm5125_vm15 = vmpackc.low %vm490_vm8, %vm474_vm7  ;;  %vm972_vm7 = vcmp.eq.s32.totalorder %v6228_v13, %v7126_v42  ;;  %vm925_vm12 = vcmp.eq.s32.totalorder %v6254_v16, %v7114_v40  ;;  %v5651_v13 = vld [vmem:[#allocation2 + $0x50] sm:$0xff]  }
 0x18b   : > { %5126 = vmatpush1.bf16.msk.msra.mxu0 %vm5125_vm15, %v5868_v0  ;;  %vm5189_vm2 = vmpackc.low %vm492_vm11, %vm476_vm10  ;;  %vm939_vm10 = vcmp.eq.s32.totalorder %v6252_v15, %v7106_v39  ;;  %vm922_vm15 = vcmp.eq.s32.totalorder %v6254_v16, %v7120_v41 }
 0x18c   : > { %5190 = vmatpush1.bf16.msk.msra.mxu1 %vm5189_vm2, %v5868_v0  ;;  %vm5127_vm5 = vmpackc.low %vm971_vm14, %vm955_vm13  ;;  %vm941_vm13 = vcmp.eq.s32.totalorder %v6252_v15, %v7114_v40  ;;  %vm924_vm2 = vcmp.eq.s32.totalorder %v6254_v16, %v7126_v42  ;;  %v5654_v16 = vld [vmem:[#allocation2 + $0x90] sm:$0xff]  }
 0x18d   : > { %5128 = vmatprep.subr.msk.bf16.mxu0 %vm5127_vm5, %v5868_v0  ;;  %vm5191_vm8 = vmpackc.low %vm973_vm1, %vm957_vm0  ;;  %vm938_vm0 = vcmp.eq.s32.totalorder %v6252_v15, %v7120_v41  ;;  %vm891_vm5 = vcmp.eq.s32.totalorder %v6278_v18, %v7106_v39 }
 0x18e   : > { %5192 = vmatprep.subr.msk.bf16.mxu1 %vm5191_vm8, %v5868_v0  ;;  %vm5129_vm11 = vmpackc.low %vm970_vm4, %vm954_vm3  ;;  %vm940_vm3 = vcmp.eq.s32.totalorder %v6252_v15, %v7126_v42  ;;  %vm893_vm8 = vcmp.eq.s32.totalorder %v6278_v18, %v7114_v40  ;;  %v5653_v15 = vld [vmem:[#allocation2 + $0x10] sm:$0xff]  }
 0x18f   : > { %5130 = vmatpush2.bf16.msk.msra.mxu0 %vm5129_vm11, %v5868_v0  ;;  %vm5193_vm14 = vmpackc.low %vm972_vm7, %vm956_vm6  ;;  %vm907_vm6 = vcmp.eq.s32.totalorder %v6276_v17, %v7106_v39  ;;  %vm890_vm11 = vcmp.eq.s32.totalorder %v6278_v18, %v7120_v41 }
 0x190   : > { %5194 = vmatpush2.bf16.msk.msra.mxu1 %vm5193_vm14, %v5868_v0  ;;  %vm5131_vm1 = vmpackc.low %vm939_vm10, %vm923_vm9  ;;  %vm909_vm9 = vcmp.eq.s32.totalorder %v6276_v17, %v7114_v40  ;;  %vm892_vm14 = vcmp.eq.s32.totalorder %v6278_v18, %v7126_v42  ;;  %v5656_v18 = vld [vmem:[#allocation2 + $0xc8] sm:$0xff]  }
 0x191   : > { %5132 = vmatprep.subr.msk.bf16.mxu0 %vm5131_vm1, %v5868_v0  ;;  %vm5195_vm4 = vmpackc.low %vm941_vm13, %vm925_vm12  ;;  %vm906_vm12 = vcmp.eq.s32.totalorder %v6276_v17, %v7120_v41  ;;  %vm859_vm1 = vcmp.eq.s32.totalorder %v6302_v20, %v7106_v39 }
 0x192   : > { %5196 = vmatprep.subr.msk.bf16.mxu1 %vm5195_vm4, %v5868_v0  ;;  %vm5133_vm7 = vmpackc.low %vm938_vm0, %vm922_vm15  ;;  %vm908_vm15 = vcmp.eq.s32.totalorder %v6276_v17, %v7126_v42  ;;  %vm861_vm4 = vcmp.eq.s32.totalorder %v6302_v20, %v7114_v40  ;;  %v5655_v17 = vld [vmem:[#allocation2 + $0x48] sm:$0xff]  }
 0x193   : > { %5134 = vmatpush2.bf16.msk.msra.mxu0 %vm5133_vm7, %v5868_v0  ;;  %vm5197_vm10 = vmpackc.low %vm940_vm3, %vm924_vm2  ;;  %vm875_vm2 = vcmp.eq.s32.totalorder %v6300_v19, %v7106_v39  ;;  %vm858_vm7 = vcmp.eq.s32.totalorder %v6302_v20, %v7120_v41 }
 0x194   : > { %5198 = vmatpush2.bf16.msk.msra.mxu1 %vm5197_vm10, %v5868_v0  ;;  %vm5135_vm13 = vmpackc.low %vm907_vm6, %vm891_vm5  ;;  %vm877_vm5 = vcmp.eq.s32.totalorder %v6300_v19, %v7114_v40  ;;  %vm860_vm10 = vcmp.eq.s32.totalorder %v6302_v20, %v7126_v42  ;;  %v5658_v20 = vld [vmem:[#allocation2 + $0x88] sm:$0xff]  }
 0x195   : > { %5136 = vmatprep.subr.msk.bf16.mxu0 %vm5135_vm13, %v5868_v0  ;;  %vm5199_vm0 = vmpackc.low %vm909_vm9, %vm893_vm8  ;;  %vm874_vm8 = vcmp.eq.s32.totalorder %v6300_v19, %v7120_v41  ;;  %vm827_vm13 = vcmp.eq.s32.totalorder %v6326_v22, %v7106_v39 }
 0x196   : > { %5200 = vmatprep.subr.msk.bf16.mxu1 %vm5199_vm0, %v5868_v0  ;;  %vm5137_vm3 = vmpackc.low %vm906_vm12, %vm890_vm11  ;;  %vm876_vm11 = vcmp.eq.s32.totalorder %v6300_v19, %v7126_v42  ;;  %vm829_vm0 = vcmp.eq.s32.totalorder %v6326_v22, %v7114_v40  ;;  %v5657_v19 = vld [vmem:[#allocation2 + $0x8] sm:$0xff]  }
 0x197   : > { %5138 = vmatpush2.bf16.msk.msra.mxu0 %vm5137_vm3, %v5868_v0  ;;  %vm5201_vm6 = vmpackc.low %vm908_vm15, %vm892_vm14  ;;  %vm843_vm14 = vcmp.eq.s32.totalorder %v6324_v21, %v7106_v39  ;;  %vm826_vm3 = vcmp.eq.s32.totalorder %v6326_v22, %v7120_v41 }
 0x198   : > { %5202 = vmatpush2.bf16.msk.msra.mxu1 %vm5201_vm6, %v5868_v0  ;;  %vm5139_vm9 = vmpackc.low %vm875_vm2, %vm859_vm1  ;;  %vm845_vm1 = vcmp.eq.s32.totalorder %v6324_v21, %v7114_v40  ;;  %vm828_vm6 = vcmp.eq.s32.totalorder %v6326_v22, %v7126_v42  ;;  %v5660_v22 = vld [vmem:[#allocation2 + $0xc0] sm:$0xff]  }
 0x199   : > { %5140 = vmatprep.subr.msk.bf16.mxu0 %vm5139_vm9, %v5868_v0  ;;  %vm5203_vm12 = vmpackc.low %vm877_vm5, %vm861_vm4  ;;  %vm842_vm4 = vcmp.eq.s32.totalorder %v6324_v21, %v7120_v41  ;;  %vm795_vm9 = vcmp.eq.s32.totalorder %v6350_v24, %v7106_v39 }
 0x19a   : > { %5204 = vmatprep.subr.msk.bf16.mxu1 %vm5203_vm12, %v5868_v0  ;;  %vm5141_vm15 = vmpackc.low %vm874_vm8, %vm858_vm7  ;;  %vm844_vm7 = vcmp.eq.s32.totalorder %v6324_v21, %v7126_v42  ;;  %vm797_vm12 = vcmp.eq.s32.totalorder %v6350_v24, %v7114_v40  ;;  %v5659_v21 = vld [vmem:[#allocation2 + $0x40] sm:$0xff]  }
 0x19b   : > { %5142 = vmatpush2.bf16.msk.msra.mxu0 %vm5141_vm15, %v5868_v0  ;;  %vm5205_vm2 = vmpackc.low %vm876_vm11, %vm860_vm10  ;;  %vm811_vm10 = vcmp.eq.s32.totalorder %v6348_v23, %v7106_v39  ;;  %vm794_vm15 = vcmp.eq.s32.totalorder %v6350_v24, %v7120_v41 }
 0x19c   : > { %5206 = vmatpush2.bf16.msk.msra.mxu1 %vm5205_vm2, %v5868_v0  ;;  %vm5143_vm5 = vmpackc.low %vm843_vm14, %vm827_vm13  ;;  %vm813_vm13 = vcmp.eq.s32.totalorder %v6348_v23, %v7114_v40  ;;  %vm796_vm2 = vcmp.eq.s32.totalorder %v6350_v24, %v7126_v42  ;;  %v5662_v24 = vld [vmem:[#allocation2 + $0x80] sm:$0xff]  }
 0x19d   : > { %5144 = vmatprep.subr.msk.bf16.mxu0 %vm5143_vm5, %v5868_v0  ;;  %vm5207_vm8 = vmpackc.low %vm845_vm1, %vm829_vm0  ;;  %vm810_vm0 = vcmp.eq.s32.totalorder %v6348_v23, %v7120_v41  ;;  %vm763_vm5 = vcmp.eq.s32.totalorder %v6374_v26, %v7106_v39 }
 0x19e   : > { %5208 = vmatprep.subr.msk.bf16.mxu1 %vm5207_vm8, %v5868_v0  ;;  %vm5145_vm11 = vmpackc.low %vm842_vm4, %vm826_vm3  ;;  %vm812_vm3 = vcmp.eq.s32.totalorder %v6348_v23, %v7126_v42  ;;  %vm765_vm8 = vcmp.eq.s32.totalorder %v6374_v26, %v7114_v40  ;;  %v5661_v23 = vld [vmem:[#allocation2] sm:$0xff]  }
 0x19f   : > { %5146 = vmatpush2.bf16.msk.msra.mxu0 %vm5145_vm11, %v5868_v0  ;;  %vm5209_vm14 = vmpackc.low %vm844_vm7, %vm828_vm6  ;;  %vm779_vm6 = vcmp.eq.s32.totalorder %v6372_v25, %v7106_v39  ;;  %vm762_vm11 = vcmp.eq.s32.totalorder %v6374_v26, %v7120_v41 }
 0x1a0   : > { %5210 = vmatpush2.bf16.msk.msra.mxu1 %vm5209_vm14, %v5868_v0  ;;  %vm5147_vm1 = vmpackc.low %vm811_vm10, %vm795_vm9  ;;  %vm781_vm9 = vcmp.eq.s32.totalorder %v6372_v25, %v7114_v40  ;;  %vm764_vm14 = vcmp.eq.s32.totalorder %v6374_v26, %v7126_v42  ;;  %v5664_v26 = vld [vmem:[#allocation2 + $0x1f8] sm:$0xff]  }
 0x1a1   : > { %5148 = vmatprep.subr.msk.bf16.mxu0 %vm5147_vm1, %v5868_v0  ;;  %vm5211_vm4 = vmpackc.low %vm813_vm13, %vm797_vm12  ;;  %vm778_vm12 = vcmp.eq.s32.totalorder %v6372_v25, %v7120_v41  ;;  %vm731_vm1 = vcmp.eq.s32.totalorder %v6398_v28, %v7106_v39 }
 0x1a2   : > { %5212 = vmatprep.subr.msk.bf16.mxu1 %vm5211_vm4, %v5868_v0  ;;  %vm5149_vm7 = vmpackc.low %vm810_vm0, %vm794_vm15  ;;  %vm780_vm15 = vcmp.eq.s32.totalorder %v6372_v25, %v7126_v42  ;;  %vm733_vm4 = vcmp.eq.s32.totalorder %v6398_v28, %v7114_v40  ;;  %v5663_v25 = vld [vmem:[#allocation2 + $0x178] sm:$0xff]  }
 0x1a3   : > { %5150 = vmatpush2.bf16.msk.msra.mxu0 %vm5149_vm7, %v5868_v0  ;;  %vm5213_vm10 = vmpackc.low %vm812_vm3, %vm796_vm2  ;;  %vm747_vm2 = vcmp.eq.s32.totalorder %v6396_v27, %v7106_v39  ;;  %vm730_vm7 = vcmp.eq.s32.totalorder %v6398_v28, %v7120_v41  ;;  %v5674_v39 = vld [vmem:[#allocation2 + $0x1a8] sm:$0xff]  }
 0x1a4   : > { %5214 = vmatpush2.bf16.msk.msra.mxu1 %vm5213_vm10, %v5868_v0  ;;  %vm5151_vm13 = vmpackc.low %vm779_vm6, %vm763_vm5  ;;  %vm749_vm5 = vcmp.eq.s32.totalorder %v6396_v27, %v7114_v40  ;;  %vm732_vm10 = vcmp.eq.s32.totalorder %v6398_v28, %v7126_v42  ;;  %v5675_v40 = vld [vmem:[#allocation2 + $0x160] sm:$0xff]  }
 0x1a5   : > { %5152 = vmatprep.subr.msk.bf16.mxu0 %vm5151_vm13, %v5868_v0  ;;  %vm5215_vm0 = vmpackc.low %vm781_vm9, %vm765_vm8  ;;  %vm746_vm8 = vcmp.eq.s32.totalorder %v6396_v27, %v7120_v41  ;;  %v5676_v41 = vld [vmem:[#allocation2 + $0x1e0] sm:$0xff]  }
 0x1a6   : > { %5216 = vmatprep.subr.msk.bf16.mxu1 %vm5215_vm0, %v5868_v0  ;;  %vm5153_vm3 = vmpackc.low %vm778_vm12, %vm762_vm11  ;;  %vm748_vm11 = vcmp.eq.s32.totalorder %v6396_v27, %v7126_v42  ;;  %v5665_v27 = vld [vmem:[#allocation2 + $0x138] sm:$0xff]   ;;  %v5677_v42 = vld [vmem:[#allocation2 + $0x120] sm:$0xff]  }
 0x1a7   : > { %5154 = vmatpush2.bf16.msk.msra.mxu0 %vm5153_vm3, %v5868_v0  ;;  %vm5217_vm6 = vmpackc.low %vm780_vm15, %vm764_vm14  ;;  %vm5869_vm15 = vmmov 0  }
 0x1a8   : > { %5218 = vmatpush2.bf16.msk.msra.mxu1 %vm5217_vm6, %v5868_v0  ;;  %vm5155_vm9 = vmpackc.low %vm747_vm2, %vm731_vm1 }
 0x1a9   : > { %5156 = vmatprep.subr.msk.bf16.mxu0 %vm5155_vm9, %v5868_v0  ;;  %vm5219_vm12 = vmpackc.low %vm749_vm5, %vm733_vm4 }
 0x1aa   : > { %5220 = vmatprep.subr.msk.bf16.mxu1 %vm5219_vm12, %v5868_v0  ;;  %vm5157_vm13 = vmpackc.low %vm746_vm8, %vm730_vm7 }
 0x1ab   : > { %5158 = vmatpush2.bf16.msk.msra.mxu0 %vm5157_vm13, %v5868_v0  ;;  %vm5221_vm14 = vmpackc.low %vm748_vm11, %vm732_vm10 }
 0x1ac   : > { %5222 = vmatpush2.bf16.msk.msra.mxu1 %vm5221_vm14, %v5868_v0  ;;  %5366 = vmatprep.subr.bf16.mxu0 %v5631_v34  ;;  %v5678_v34 = vld [vmem:[#allocation2 + $0x1a0] sm:$0xff]  }
 0x1ad   : > { %5388 = vmatprep.subr.bf16.mxu1 %v5632_v43  ;;  %v5679_v43 = vld [vmem:[#allocation2 + $0x158] sm:$0xff]  }
 0x1ae   : > { %v7450_v49 = vpop.f32.mrf.mxu0  ;;  %2547 = vmatmul.mubr.bf16.vlgmr.msra.gmra.mxu0 %v6451_v32 }
 0x1af   : > { %v7453_v50 = vpop.f32.mrf.mxu1  ;;  %2590 = vmatmul.mubr.bf16.vlgmr.msra.gmra.mxu1 %v6451_v32  ;;  %5367 = vmatpush3.bf16.msra.mxu0 %v5633_v44  ;;  %v5668_v32 = vld [vmem:[#allocation2 + $0x1f0] sm:$0xff]   ;;  %v5680_v44 = vld [vmem:[#allocation2 + $0x1d8] sm:$0xff]  }
 0x1b0   : > { %5389 = vmatpush3.bf16.msra.mxu1 %v5634_v46  ;;  %v2292_v54 = vpop.f32.mrf.mxu0  ;;  %5368 = vmatprep.subr.bf16.mxu0 %v5635_v47  ;;  %v5681_v46 = vld [vmem:[#allocation2 + $0x118] sm:$0xff]  }
 0x1b1   : > { %v2335_v59 = vpop.f32.mrf.mxu1  ;;  %5390 = vmatprep.subr.bf16.mxu1 %v5636_v48  ;;  %v5682_v47 = vld [vmem:[#allocation2 + $0x198] sm:$0xff]   ;;  %v5683_v48 = vld [vmem:[#allocation2 + $0x150] sm:$0xff]  }
 0x1b2   : > { %v7456_v61 = vpop.f32.mrf.mxu0 }
 0x1b3   : > { %v7458_v62 = vpop.f32.mrf.mxu1  ;;  %5369 = vmatpush3.bf16.msra.mxu0 %v5637_v51  ;;  %v2600_v28 = vpack.c.bf16 %v7456_v61, %v7450_v49  ;;  %v5684_v49 = vld [vmem:[#allocation2 + $0x1d0] sm:$0xff]   ;;  %v5692_v61 = vld [vmem:[#allocation2 + $0x1c0] sm:$0xff]  }
 0x1b4   : > { %5391 = vmatpush3.bf16.msra.mxu1 %v5638_v57  ;;  %v2296_v0 = vpop.f32.mrf.mxu0  ;;  %5370 = vmatprep.subr.bf16.mxu0 %v5639_v58  ;;  %v2602_v31 = vpack.c.bf16 %v7458_v62, %v7453_v50  ;;  %v5685_v50 = vld [vmem:[#allocation2 + $0x110] sm:$0xff]   ;;  %v5688_v57 = vld [vmem:[#allocation2 + $0x1c8] sm:$0xff]   ;;  %v5693_v62 = vld [vmem:[#allocation2 + $0x100] sm:$0xff]  }
 0x1b5   : > { %v2601_v2 = vpack.c.bf16 %v2296_v0, %v2292_v54  ;;  %v2339_v3 = vpop.f32.mrf.mxu1  ;;  %5392 = vmatprep.subr.bf16.mxu1 %v5640_v60  ;;  %v5686_v51 = vld [vmem:[#allocation2 + $0x190] sm:$0xff]   ;;  %v5687_v54 = vld [vmem:[#allocation2 + $0x148] sm:$0xff]   ;;  %v5691_v60 = vld [vmem:[#allocation2 + $0x140] sm:$0xff]  }
 0x1b6   : > { %v2603_v6 = vpack.c.bf16 %v2339_v3, %v2335_v59  ;;  %v5689_v58 = vld [vmem:[#allocation2 + $0x108] sm:$0xff]   ;;  %v5695_v0 = vld [vmem:[#allocation2 + $0x278] sm:$0xff]  }
 0x1b7   : > { %5371 = vmatpush3.bf16.msra.mxu0 %v5641_v63  ;;  %3672 = vmatprep.mubr.bf16.mxu0 %v2601_v2  ;;  %v5690_v59 = vld [vmem:[#allocation2 + $0x188] sm:$0xff]   ;;  %v5694_v63 = vld [vmem:[#allocation2 + $0x180] sm:$0xff]  }
 0x1b8   : > { %5393 = vmatpush3.bf16.msra.mxu1 %v5642_v1  ;;  %3713 = vmatprep.mubr.bf16.mxu1 %v2603_v6  ;;  %v5696_v1 = vld [vmem:[#allocation2 + $0x2f8] sm:$0xff]  }
 0x1b9   : > { %5372 = vmatprep.subr.bf16.mxu0 %v5643_v4  ;;  %5394 = vmatprep.subr.bf16.mxu1 %v5644_v5 }
 0x1bb   : > { %5373 = vmatpush3.bf16.msra.mxu0 %v5645_v7 }
 0x1bc   : > { %5395 = vmatpush3.bf16.msra.mxu1 %v5646_v8  ;;  %5374 = vmatprep.subr.bf16.mxu0 %v5647_v9 }
 0x1bd   : > { %5396 = vmatprep.subr.bf16.mxu1 %v5648_v10 }
 0x1bf   : > { %5375 = vmatpush3.bf16.msra.mxu0 %v5649_v11  ;;  %v5697_v11 = vld [vmem:[#allocation2 + $0x238] sm:$0xff]  }
 0x1c0   : > { %5397 = vmatpush3.bf16.msra.mxu1 %v5650_v12  ;;  %5376 = vmatprep.subr.bf16.mxu0 %v5651_v13 }
 0x1c1   : > { %5398 = vmatprep.subr.bf16.mxu1 %v5652_v14  ;;  %v5698_v14 = vld [vmem:[#allocation2 + $0x2b8] sm:$0xff]  }
 0x1c3   : > { %5377 = vmatpush3.bf16.msra.mxu0 %v5653_v15  ;;  %v5699_v15 = vld [vmem:[#allocation2 + $0x270] sm:$0xff]  }
 0x1c4   : > { %5399 = vmatpush3.bf16.msra.mxu1 %v5654_v16  ;;  %5378 = vmatprep.subr.bf16.mxu0 %v5655_v17  ;;  %v5700_v17 = vld [vmem:[#allocation2 + $0x2f0] sm:$0xff]  }
 0x1c5   : > { %5400 = vmatprep.subr.bf16.mxu1 %v5656_v18  ;;  %v5701_v18 = vld [vmem:[#allocation2 + $0x230] sm:$0xff]  }
 0x1c7   : > { %5379 = vmatpush3.bf16.msra.mxu0 %v5657_v19  ;;  %v5702_v19 = vld [vmem:[#allocation2 + $0x2b0] sm:$0xff]  }
 0x1c8   : > { %5401 = vmatpush3.bf16.msra.mxu1 %v5658_v20  ;;  %5380 = vmatprep.subr.bf16.mxu0 %v5659_v21  ;;  %v5703_v20 = vld [vmem:[#allocation2 + $0x268] sm:$0xff]  }
 0x1c9   : > { %5402 = vmatprep.subr.bf16.mxu1 %v5660_v22  ;;  %v5704_v21 = vld [vmem:[#allocation2 + $0x2e8] sm:$0xff]  }
 0x1ca   : > { %v5705_v22 = vld [vmem:[#allocation2 + $0x228] sm:$0xff]  }
 0x1cb   : > { %5381 = vmatpush3.bf16.msra.mxu0 %v5661_v23  ;;  %v5706_v23 = vld [vmem:[#allocation2 + $0x2a8] sm:$0xff]  }
 0x1cc   : > { %5403 = vmatpush3.bf16.msra.mxu1 %v5662_v24  ;;  %5410 = vmatprep.subr.bf16.mxu0 %v5663_v25  ;;  %v5707_v24 = vld [vmem:[#allocation2 + $0x260] sm:$0xff]  }
 0x1cd   : > { %5432 = vmatprep.subr.bf16.mxu1 %v5664_v26  ;;  %v5708_v25 = vld [vmem:[#allocation2 + $0x2e0] sm:$0xff]  }
 0x1ce   : > { %3673 = vmatmul.mubr.bf16.vlgmr.msra.gmra.mxu0 %v2600_v28  ;;  %v5709_v26 = vld [vmem:[#allocation2 + $0x220] sm:$0xff]   ;;  %v5711_v28 = vld [vmem:[#allocation2 + $0x258] sm:$0xff]  }
 0x1cf   : > { %3714 = vmatmul.mubr.bf16.vlgmr.msra.gmra.mxu1 %v2602_v31  ;;  %5411 = vmatpush3.bf16.msra.mxu0 %v5665_v27  ;;  %v5710_v27 = vld [vmem:[#allocation2 + $0x2a0] sm:$0xff]   ;;  %v5714_v31 = vld [vmem:[#allocation2 + $0x298] sm:$0xff]  }
 0x1d0   : > { %5433 = vmatpush3.bf16.msra.mxu1 %v5666_v29  ;;  %5412 = vmatprep.subr.bf16.mxu0 %v5667_v30  ;;  %v5712_v29 = vld [vmem:[#allocation2 + $0x2d8] sm:$0xff]  }
 0x1d1   : > { %5434 = vmatprep.subr.bf16.mxu1 %v5668_v32  ;;  %v5713_v30 = vld [vmem:[#allocation2 + $0x218] sm:$0xff]   ;;  %v5715_v32 = vld [vmem:[#allocation2 + $0x250] sm:$0xff]  }
 0x1d3   : > { %5413 = vmatpush3.bf16.msra.mxu0 %v5669_v33  ;;  %v5716_v33 = vld [vmem:[#allocation2 + $0x2d0] sm:$0xff]  }
 0x1d4   : > { %5435 = vmatpush3.bf16.msra.mxu1 %v5670_v35  ;;  %5414 = vmatprep.subr.bf16.mxu0 %v5671_v36  ;;  %v5717_v35 = vld [vmem:[#allocation2 + $0x210] sm:$0xff]  }
 0x1d5   : > { %5436 = vmatprep.subr.bf16.mxu1 %v5672_v37  ;;  %v5718_v36 = vld [vmem:[#allocation2 + $0x290] sm:$0xff]   ;;  %v5719_v37 = vld [vmem:[#allocation2 + $0x248] sm:$0xff]  }
 0x1d7   : > { %5415 = vmatpush3.bf16.msra.mxu0 %v5673_v38  ;;  %v5720_v38 = vld [vmem:[#allocation2 + $0x2c8] sm:$0xff]  }
 0x1d8   : > { %5437 = vmatpush3.bf16.msra.mxu1 %v5674_v39  ;;  %5416 = vmatprep.subr.bf16.mxu0 %v5675_v40  ;;  %v5721_v39 = vld [vmem:[#allocation2 + $0x208] sm:$0xff]  }
 0x1d9   : > { %5438 = vmatprep.subr.bf16.mxu1 %v5676_v41  ;;  %v5722_v40 = vld [vmem:[#allocation2 + $0x288] sm:$0xff]   ;;  %v5723_v41 = vld [vmem:[#allocation2 + $0x240] sm:$0xff]  }
 0x1db   : > { %5417 = vmatpush3.bf16.msra.mxu0 %v5677_v42  ;;  %v5724_v42 = vld [vmem:[#allocation2 + $0x2c0] sm:$0xff]  }
 0x1dc   : > { %5439 = vmatpush3.bf16.msra.mxu1 %v5678_v34  ;;  %5418 = vmatprep.subr.bf16.mxu0 %v5679_v43  ;;  %v5725_v34 = vld [vmem:[#allocation2 + $0x200] sm:$0xff]  }
 0x1dd   : > { %5440 = vmatprep.subr.bf16.mxu1 %v5680_v44  ;;  %v5726_v43 = vld [vmem:[#allocation2 + $0x280] sm:$0xff]   ;;  %v5727_v44 = vld [vmem:[#allocation2 + $0x378] sm:$0xff]  }
 0x1df   : > { %5419 = vmatpush3.bf16.msra.mxu0 %v5681_v46  ;;  %v5728_v46 = vld [vmem:[#allocation2 + $0x3f8] sm:$0xff]  }
 0x1e0   : > { %5441 = vmatpush3.bf16.msra.mxu1 %v5682_v47  ;;  %5420 = vmatprep.subr.bf16.mxu0 %v5683_v48  ;;  %v344_v47 = vadd.f32 %v6030_v52, %v6035_v55  ;;  %v347_v48 = vadd.f32 %v6032_v53, %v6037_v56  ;;  %v5732_v55 = vld [vmem:[#allocation2 + $0x3f0] sm:$0xff]  }
 0x1e1   : > { %5442 = vmatprep.subr.bf16.mxu1 %v5684_v49  ;;  %v5733_v53 = vld [vmem:[#allocation2 + $0x330] sm:$0xff]  }
 0x1e2   : > { %345 = vadd.xlane.f32.xlu0 %v344_v47  ;;  %348 = vadd.xlane.f32.xlu1 %v347_v48  ;;  %v5734_v56 = vld [vmem:[#allocation2 + $0x3b0] sm:$0xff]   ;;  %v5766_v47 = vld [vmem:[%s7556_s3] sm:$0xff]  }
 0x1e3   : > { %5421 = vmatpush3.bf16.msra.mxu0 %v5685_v50 }
 0x1e4   : > { %5443 = vmatpush3.bf16.msra.mxu1 %v5686_v51  ;;  %5422 = vmatprep.subr.bf16.mxu0 %v5687_v54 }
 0x1e5   : > { %5444 = vmatprep.subr.bf16.mxu1 %v5688_v57 }
 0x1e7   : > { %5423 = vmatpush3.bf16.msra.mxu0 %v5689_v58 }
 0x1e8   : > { %5445 = vmatpush3.bf16.msra.mxu1 %v5690_v59  ;;  %5424 = vmatprep.subr.bf16.mxu0 %v5691_v60 }
 0x1e9   : > { %5446 = vmatprep.subr.bf16.mxu1 %v5692_v61 }
 0x1eb   : > { %5425 = vmatpush3.bf16.msra.mxu0 %v5693_v62  ;;  %v5729_v62 = vld [vmem:[#allocation2 + $0x338] sm:$0xff]  }
 0x1ec   : > { %5447 = vmatpush3.bf16.msra.mxu1 %v5694_v63  ;;  %5454 = vmatprep.subr.bf16.mxu0 %v5695_v0 }
 0x1ed   : > { %5476 = vmatprep.subr.bf16.mxu1 %v5696_v1  ;;  %v5730_v1 = vld [vmem:[#allocation2 + $0x3b8] sm:$0xff]  }
 0x1ee   : > { %v2376_v2 = vpop.f32.mrf.mxu0 }
 0x1ef   : > { %v2419_v3 = vpop.f32.mrf.mxu1 }
 0x1f0   : > { %v2378_v4 = vpop.f32.mrf.mxu0 }
 0x1f1   : > { %v2421_v5 = vpop.f32.mrf.mxu1 }
 0x1f2   : > { %v2380_v6 = vpop.f32.mrf.mxu0 }
 0x1f3   : > { %v2423_v7 = vpop.f32.mrf.mxu1  ;;  %v2604_v12 = vpack.c.bf16 %v2380_v6, %v2376_v2  ;;  %v5731_v2 = vld [vmem:[#allocation2 + $0x370] sm:$0xff]   ;;  %v5738_v6 = vld [vmem:[#allocation2 + $0x3a8] sm:$0xff]  }
 0x1f4   : > { %v2382_v8 = vpop.f32.mrf.mxu0  ;;  %v2606_v16 = vpack.c.bf16 %v2423_v7, %v2419_v3  ;;  %v5735_v3 = vld [vmem:[#allocation2 + $0x368] sm:$0xff]   ;;  %v5739_v7 = vld [vmem:[#allocation2 + $0x360] sm:$0xff]  }
 0x1f5   : > { %v2605_v9 = vpack.c.bf16 %v2382_v8, %v2378_v4  ;;  %v2425_v10 = vpop.f32.mrf.mxu1  ;;  %v5736_v4 = vld [vmem:[#allocation2 + $0x3e8] sm:$0xff]   ;;  %v5740_v8 = vld [vmem:[#allocation2 + $0x3e0] sm:$0xff]  }
 0x1f6   : > { %v2607_v13 = vpack.c.bf16 %v2425_v10, %v2421_v5  ;;  %v5737_v5 = vld [vmem:[#allocation2 + $0x328] sm:$0xff]   ;;  %v5742_v10 = vld [vmem:[#allocation2 + $0x3a0] sm:$0xff]  }
 0x1f7   : > { %3754 = vmatprep.mubr.bf16.mxu0 %v2605_v9  ;;  %v5741_v9 = vld [vmem:[#allocation2 + $0x320] sm:$0xff]  }
 0x1f8   : > { %3795 = vmatprep.mubr.bf16.mxu1 %v2607_v13  ;;  %3755 = vmatmul.mubr.bf16.vlgmr.msra.gmra.mxu0 %v2604_v12  ;;  %v5744_v12 = vld [vmem:[#allocation2 + $0x3d8] sm:$0xff]  }
 0x1f9   : > { %3796 = vmatmul.mubr.bf16.vlgmr.msra.gmra.mxu1 %v2606_v16  ;;  %5455 = vmatpush3.bf16.msra.mxu0 %v5697_v11  ;;  %v5743_v11 = vld [vmem:[#allocation2 + $0x358] sm:$0xff]   ;;  %v5748_v16 = vld [vmem:[#allocation2 + $0x3d0] sm:$0xff]  }
 0x1fa   : > { %5477 = vmatpush3.bf16.msra.mxu1 %v5698_v14  ;;  %5456 = vmatprep.subr.bf16.mxu0 %v5699_v15  ;;  %v5745_v13 = vld [vmem:[#allocation2 + $0x318] sm:$0xff]   ;;  %v5747_v15 = vld [vmem:[#allocation2 + $0x350] sm:$0xff]  }
 0x1fb   : > { %5478 = vmatprep.subr.bf16.mxu1 %v5700_v17  ;;  %v5746_v14 = vld [vmem:[#allocation2 + $0x398] sm:$0xff]   ;;  %v5749_v17 = vld [vmem:[#allocation2 + $0x310] sm:$0xff]  }
 0x1fd   : > { %5457 = vmatpush3.bf16.msra.mxu0 %v5701_v18  ;;  %v5750_v18 = vld [vmem:[#allocation2 + $0x390] sm:$0xff]  }
 0x1fe   : > { %5479 = vmatpush3.bf16.msra.mxu1 %v5702_v19  ;;  %5458 = vmatprep.subr.bf16.mxu0 %v5703_v20  ;;  %v5751_v19 = vld [vmem:[#allocation2 + $0x348] sm:$0xff]  }
 0x1ff   : > { %5480 = vmatprep.subr.bf16.mxu1 %v5704_v21  ;;  %v5752_v20 = vld [vmem:[#allocation2 + $0x3c8] sm:$0xff]  }
 0x200   : > { %v5753_v21 = vld [vmem:[#allocation2 + $0x308] sm:$0xff]  }
 0x201   : > { %5459 = vmatpush3.bf16.msra.mxu0 %v5705_v22  ;;  %v5754_v22 = vld [vmem:[#allocation2 + $0x388] sm:$0xff]  }
 0x202   : > { %5481 = vmatpush3.bf16.msra.mxu1 %v5706_v23  ;;  %5460 = vmatprep.subr.bf16.mxu0 %v5707_v24  ;;  %v5755_v23 = vld [vmem:[#allocation2 + $0x340] sm:$0xff]  }
 0x203   : > { %5482 = vmatprep.subr.bf16.mxu1 %v5708_v25  ;;  %v5756_v24 = vld [vmem:[#allocation2 + $0x3c0] sm:$0xff]  }
 0x204   : > { %v5757_v25 = vld [vmem:[#allocation2 + $0x300] sm:$0xff]  }
 0x205   : > { %5461 = vmatpush3.bf16.msra.mxu0 %v5709_v26  ;;  %v5758_v26 = vld [vmem:[#allocation2 + $0x380] sm:$0xff]  }
 0x206   : > { %5483 = vmatpush3.bf16.msra.mxu1 %v5710_v27  ;;  %5462 = vmatprep.subr.bf16.mxu0 %v5711_v28 }
 0x207   : > { %5484 = vmatprep.subr.bf16.mxu1 %v5712_v29 }
 0x209   : > { %5463 = vmatpush3.bf16.msra.mxu0 %v5713_v30 }
 0x20a   : > { %5485 = vmatpush3.bf16.msra.mxu1 %v5714_v31  ;;  %5464 = vmatprep.subr.bf16.mxu0 %v5715_v32 }
 0x20b   : > { %5486 = vmatprep.subr.bf16.mxu1 %v5716_v33 }
 0x20d   : > { %5465 = vmatpush3.bf16.msra.mxu0 %v5717_v35 }
 0x20e   : > { %5487 = vmatpush3.bf16.msra.mxu1 %v5718_v36  ;;  %5466 = vmatprep.subr.bf16.mxu0 %v5719_v37 }
 0x20f   : > { %5488 = vmatprep.subr.bf16.mxu1 %v5720_v38 }
 0x211   : > { %5467 = vmatpush3.bf16.msra.mxu0 %v5721_v39 }
 0x212   : > { %5489 = vmatpush3.bf16.msra.mxu1 %v5722_v40  ;;  %5468 = vmatprep.subr.bf16.mxu0 %v5723_v41  ;;  %v5759_v40 = vld [vmem:[%s7556_s3 + $0x38] sm:$0xff]   ;;  %v5760_v41 = vld [vmem:[%s7556_s3 + $0x30] sm:$0xff]  }
 0x213   : > { %5490 = vmatprep.subr.bf16.mxu1 %v5724_v42  ;;  %v5761_v42 = vld [vmem:[%s7556_s3 + $0x28] sm:$0xff]  }
 0x215   : > { %5469 = vmatpush3.bf16.msra.mxu0 %v5725_v34  ;;  %v5762_v34 = vld [vmem:[%s7556_s3 + $0x20] sm:$0xff]  }
 0x216   : > { %5491 = vmatpush3.bf16.msra.mxu1 %v5726_v43  ;;  %5498 = vmatprep.subr.bf16.mxu0 %v5727_v44  ;;  %v5763_v43 = vld [vmem:[%s7556_s3 + $0x18] sm:$0xff]   ;;  %v5764_v44 = vld [vmem:[%s7556_s3 + $0x10] sm:$0xff]  }
 0x217   : > { %5520 = vmatprep.subr.bf16.mxu1 %v5728_v46  ;;  %v5765_v46 = vld [vmem:[%s7556_s3 + $0x8] sm:$0xff]  }
 0x22e   : > { %v2462_v49 = vpop.f32.mrf.mxu0 }
 0x22f   : > { %v2505_v50 = vpop.f32.mrf.mxu1 }
 0x230   : > { %v2464_v51 = vpop.f32.mrf.mxu0 }
 0x231   : > { %v2507_v54 = vpop.f32.mrf.mxu1 }
 0x232   : > { %v2466_v57 = vpop.f32.mrf.mxu0 }
 0x233   : > { %v2509_v58 = vpop.f32.mrf.mxu1  ;;  %v2608_v63 = vpack.c.bf16 %v2466_v57, %v2462_v49 }
 0x234   : > { %v2468_v59 = vpop.f32.mrf.mxu0  ;;  %v2610_v52 = vpack.c.bf16 %v2509_v58, %v2505_v50 }
 0x235   : > { %v2609_v60 = vpack.c.bf16 %v2468_v59, %v2464_v51  ;;  %v2511_v61 = vpop.f32.mrf.mxu1 }
 0x236   : > { %v2611_v0 = vpack.c.bf16 %v2511_v61, %v2507_v54 }
 0x237   : > { %3836 = vmatprep.mubr.bf16.mxu0 %v2609_v60 }
 0x238   : > { %3877 = vmatprep.mubr.bf16.mxu1 %v2611_v0  ;;  %3837 = vmatmul.mubr.bf16.vlgmr.msra.gmra.mxu0 %v2608_v63 }
 0x239   : > { %3878 = vmatmul.mubr.bf16.vlgmr.msra.gmra.mxu1 %v2610_v52  ;;  %5499 = vmatpush3.bf16.msra.mxu0 %v5729_v62 }
 0x23a   : > { %5521 = vmatpush3.bf16.msra.mxu1 %v5730_v1  ;;  %5500 = vmatprep.subr.bf16.mxu0 %v5731_v2 }
 0x23b   : > { %5522 = vmatprep.subr.bf16.mxu1 %v5732_v55 }
 0x23d   : > { %5501 = vmatpush3.bf16.msra.mxu0 %v5733_v53 }
 0x23e   : > { %5523 = vmatpush3.bf16.msra.mxu1 %v5734_v56  ;;  %5502 = vmatprep.subr.bf16.mxu0 %v5735_v3 }
 0x23f   : > { %5524 = vmatprep.subr.bf16.mxu1 %v5736_v4 }
 0x241   : > { %5503 = vmatpush3.bf16.msra.mxu0 %v5737_v5 }
 0x242   : > { %5525 = vmatpush3.bf16.msra.mxu1 %v5738_v6  ;;  %5504 = vmatprep.subr.bf16.mxu0 %v5739_v7 }
 0x243   : > { %5526 = vmatprep.subr.bf16.mxu1 %v5740_v8 }
 0x245   : > { %5505 = vmatpush3.bf16.msra.mxu0 %v5741_v9 }
 0x246   : > { %5527 = vmatpush3.bf16.msra.mxu1 %v5742_v10  ;;  %5506 = vmatprep.subr.bf16.mxu0 %v5743_v11 }
 0x247   : > { %5528 = vmatprep.subr.bf16.mxu1 %v5744_v12 }
 0x249   : > { %5507 = vmatpush3.bf16.msra.mxu0 %v5745_v13 }
 0x24a   : > { %5529 = vmatpush3.bf16.msra.mxu1 %v5746_v14  ;;  %5508 = vmatprep.subr.bf16.mxu0 %v5747_v15 }
 0x24b   : > { %5530 = vmatprep.subr.bf16.mxu1 %v5748_v16 }
 0x24d   : > { %5509 = vmatpush3.bf16.msra.mxu0 %v5749_v17 }
 0x24e   : > { %5531 = vmatpush3.bf16.msra.mxu1 %v5750_v18  ;;  %5510 = vmatprep.subr.bf16.mxu0 %v5751_v19 }
 0x24f   : > { %5532 = vmatprep.subr.bf16.mxu1 %v5752_v20 }
 0x251   : > { %5511 = vmatpush3.bf16.msra.mxu0 %v5753_v21 }
 0x252   : > { %5533 = vmatpush3.bf16.msra.mxu1 %v5754_v22  ;;  %5512 = vmatprep.subr.bf16.mxu0 %v5755_v23 }
 0x253   : > { %5534 = vmatprep.subr.bf16.mxu1 %v5756_v24 }
 0x255   : > { %5513 = vmatpush3.bf16.msra.mxu0 %v5757_v25 }
 0x256   : > { %5535 = vmatpush3.bf16.msra.mxu1 %v5758_v26  ;;  %5551 = vmatprep.subr.bf16.mxu0 %v5867_v45 }
 0x26b   : > { %v346_v5 = vpop.xlane.xlu0 %345  ;;  %v349_v6 = vpop.xlane.xlu1 %348 }
 0x26c   : > { %v350_v12 = vmax.f32 %v346_v5, 1.0  ;;  %v351_v15 = vmax.f32 %v349_v6, 1.0 }
 0x26e   : > { %v2548_v27 = vpop.f32.mrf.mxu0  ;;  %5767 = vrcp.f32 %v350_v12 }
 0x26f   : > { %v2591_v28 = vpop.f32.mrf.mxu1  ;;  %5769 = vrcp.f32 %v351_v15 }
 0x270   : > { %v2550_v29 = vpop.f32.mrf.mxu0 }
 0x271   : > { %v2593_v30 = vpop.f32.mrf.mxu1 }
 0x272   : > { %v2552_v31 = vpop.f32.mrf.mxu0 }
 0x273   : > { %v2595_v32 = vpop.f32.mrf.mxu1  ;;  %v2612_v37 = vpack.c.bf16 %v2552_v31, %v2548_v27 }
 0x274   : > { %v2554_v33 = vpop.f32.mrf.mxu0  ;;  %v2614_v39 = vpack.c.bf16 %v2595_v32, %v2591_v28 }
 0x275   : > { %v2613_v35 = vpack.c.bf16 %v2554_v33, %v2550_v29  ;;  %v2597_v36 = vpop.f32.mrf.mxu1 }
 0x276   : > { %v2615_v38 = vpack.c.bf16 %v2597_v36, %v2593_v30 }
 0x277   : > { %3918 = vmatprep.mubr.bf16.mxu0 %v2613_v35 }
 0x278   : > { %3959 = vmatprep.mubr.bf16.mxu1 %v2615_v38  ;;  %3919 = vmatmul.mubr.bf16.vlgmr.msra.gmra.mxu0 %v2612_v37 }
 0x279   : > { %3960 = vmatmul.mubr.bf16.vlgmr.msra.gmra.mxu1 %v2614_v39  ;;  %5552 = vmatpush3.bf16.msra.mxu0 %v5759_v40 }
 0x27a   : > { %5553 = vmatprep.subr.bf16.mxu0 %v5867_v45  ;;  %5567 = vmatprep.mubr.msk.bf16.mxu0 %vm5869_vm15, %v5867_v45 }
 0x27d   : > { %5554 = vmatpush3.bf16.msra.mxu0 %v5760_v41 }
 0x27e   : > { %5555 = vmatprep.subr.bf16.mxu0 %v5867_v45 }
 0x281   : > { %5556 = vmatpush3.bf16.msra.mxu0 %v5761_v42 }
 0x282   : > { %5557 = vmatprep.subr.bf16.mxu0 %v5867_v45 }
 0x285   : > { %5558 = vmatpush3.bf16.msra.mxu0 %v5762_v34 }
 0x286   : > { %5559 = vmatprep.subr.bf16.mxu0 %v5867_v45 }
 0x289   : > { %5560 = vmatpush3.bf16.msra.mxu0 %v5763_v43 }
 0x28a   : > { %5561 = vmatprep.subr.bf16.mxu0 %v5867_v45 }
 0x28d   : > { %5562 = vmatpush3.bf16.msra.mxu0 %v5764_v44 }
 0x28e   : > { %5563 = vmatprep.subr.bf16.mxu0 %v5867_v45  ;;  %v5382_v48 = vpop.f32.mrf.mxu0 }
 0x28f   : > { %v5404_v49 = vpop.f32.mrf.mxu1 }
 0x290   : > { %v5383_v50 = vpop.f32.mrf.mxu0 }
 0x291   : > { %5564 = vmatpush3.bf16.msra.mxu0 %v5765_v46  ;;  %v5405_v51 = vpop.f32.mrf.mxu1  ;;  %v5384_v53 = vadd.f32 %v5383_v50, %v5382_v48  ;;  %v5768_v46 = vpop.eup %5767 }
 0x292   : > { %5565 = vmatprep.subr.bf16.mxu0 %v5867_v45  ;;  %v5385_v54 = vpop.f32.mrf.mxu0  ;;  %v5406_v45 = vadd.f32 %v5405_v51, %v5404_v49  ;;  %v5770_v50 = vpop.eup %5769 }
 0x293   : > { %v5407_v57 = vpop.f32.mrf.mxu1 }
 0x294   : > { %v5386_v58 = vpop.f32.mrf.mxu0  ;;  %v3716_v7 = vadd.f32 %v5406_v45, %v5384_v53 }
 0x295   : > { %5566 = vmatpush3.bf16.msra.mxu0 %v5766_v47  ;;  %v5408_v60 = vpop.f32.mrf.mxu1  ;;  %v5387_v8 = vadd.f32 %v5386_v58, %v5385_v54 }
 0x296   : > { %v5409_v9 = vadd.f32 %v5408_v60, %v5407_v57 }
 0x298   : > { %v3719_v16 = vadd.f32 %v5409_v9, %v5387_v8 }
 0x2b8   : > { %v5426_v59 = vpop.f32.mrf.mxu0 }
 0x2b9   : > { %v5448_v61 = vpop.f32.mrf.mxu1 }
 0x2ba   : > { %v5427_v62 = vpop.f32.mrf.mxu0 }
 0x2bb   : > { %v5449_v63 = vpop.f32.mrf.mxu1  ;;  %v5428_v4 = vadd.f32 %v5427_v62, %v5426_v59  ;;  %v5351_v59 = vld [vmem:[%s7557_s4] ss:$0 sm:$0xff] }
 0x2bc   : > { %v5429_v0 = vpop.f32.mrf.mxu0  ;;  %v5450_v17 = vadd.f32 %v5449_v63, %v5448_v61 }
 0x2bd   : > { %v5451_v1 = vpop.f32.mrf.mxu1  ;;  %v3757_v13 = vadd.f32 %v5428_v4, %v3716_v7 }
 0x2be   : > { %v5430_v2 = vpop.f32.mrf.mxu0 }
 0x2bf   : > { %v5452_v55 = vpop.f32.mrf.mxu1  ;;  %v5431_v14 = vadd.f32 %v5430_v2, %v5429_v0  ;;  %v3798_v21 = vadd.f32 %v5450_v17, %v3757_v13 }
 0x2c0   : > { %v5453_v23 = vadd.f32 %v5452_v55, %v5451_v1 }
 0x2c1   : > { %v3760_v22 = vadd.f32 %v5431_v14, %v3719_v16 }
 0x2c3   : > { %v3801_v28 = vadd.f32 %v5453_v23, %v3760_v22 }
 0x2f8   : > { %v5470_v52 = vpop.f32.mrf.mxu0 }
 0x2f9   : > { %v5492_v56 = vpop.f32.mrf.mxu1 }
 0x2fa   : > { %v5471_v3 = vpop.f32.mrf.mxu0 }
 0x2fb   : > { %v5493_v10 = vpop.f32.mrf.mxu1  ;;  %v5472_v18 = vadd.f32 %v5471_v3, %v5470_v52 }
 0x2fc   : > { %v5473_v11 = vpop.f32.mrf.mxu0  ;;  %v5494_v29 = vadd.f32 %v5493_v10, %v5492_v56 }
 0x2fd   : > { %v5495_v19 = vpop.f32.mrf.mxu1  ;;  %v3839_v24 = vadd.f32 %v5472_v18, %v3798_v21 }
 0x2fe   : > { %v5474_v20 = vpop.f32.mrf.mxu0 }
 0x2ff   : > { %v5475_v25 = vadd.f32 %v5474_v20, %v5473_v11  ;;  %v5496_v26 = vpop.f32.mrf.mxu1  ;;  %v3880_v32 = vadd.f32 %v5494_v29, %v3839_v24 }
 0x300   : > { %v5497_v38 = vadd.f32 %v5496_v26, %v5495_v19 }
 0x301   : > { %v3842_v33 = vadd.f32 %v5475_v25, %v3801_v28 }
 0x303   : > { %v3883_v42 = vadd.f32 %v5497_v38, %v3842_v33 }
 0x338   : > { %v5514_v27 = vpop.f32.mrf.mxu0 }
 0x339   : > { %v5536_v30 = vpop.f32.mrf.mxu1 }
 0x33a   : > { %v5515_v31 = vpop.f32.mrf.mxu0 }
 0x33b   : > { %v5516_v35 = vadd.f32 %v5515_v31, %v5514_v27  ;;  %v5537_v36 = vpop.f32.mrf.mxu1 }
 0x33c   : > { %v5517_v37 = vpop.f32.mrf.mxu0  ;;  %v5538_v34 = vadd.f32 %v5537_v36, %v5536_v30 }
 0x33d   : > { %v3921_v39 = vadd.f32 %v5516_v35, %v3880_v32  ;;  %v5539_v40 = vpop.f32.mrf.mxu1 }
 0x33e   : > { %v5518_v41 = vpop.f32.mrf.mxu0 }
 0x33f   : > { %v5519_v43 = vadd.f32 %v5518_v41, %v5517_v37  ;;  %v5540_v44 = vpop.f32.mrf.mxu1  ;;  %v3962_v47 = vadd.f32 %v5538_v34, %v3921_v39 }
 0x340   : > { %v5541_v49 = vadd.f32 %v5540_v44, %v5539_v40 }
 0x341   : > { %v3924_v48 = vadd.f32 %v5519_v43, %v3883_v42  ;;  %v3969_v54 = vmul.f32 %v5768_v46, %v3962_v47 }
 0x343   : > { %v3965_v51 = vadd.f32 %v5541_v49, %v3924_v48 }
 0x345   : > { %v3971_v57 = vmul.f32 %v5770_v50, %v3965_v51 }
 0x347   : > { %v3972_v58 = vpack.c.bf16 %v3971_v57, %v3969_v54 }
 0x349   : > { %5568 = vmatmul.mubr.bf16.vlgmr.msra.gmra.mxu0 %v3972_v58 }
 0x409   : > { %v4078_v60 = vpop.f32.mrf.mxu0 }
 0x40a   : > { %v4079_v61 = vadd.f32 %v5351_v59, %v4078_v60 }
 0x40b   : > { %v5569_v62 = vpop.f32.mrf.mxu0 }
 0x40c   : > { %4085 = vst [vmem:[%s247_s10] sm:$0xff] %v4079_v61 }
 0x40d   : > { %v4081_v63 = vpop.f32.mrf.mxu0 }
 0x40e   : > { %v4082_v0 = vadd.f32 %v5351_v59, %v4081_v63 }
 0x40f   : > { %v5570_v1 = vpop.f32.mrf.mxu0 }
 0x410   : > { %4086 = vst [vmem:[%s247_s10 + $0x8] sm:$0xff] %v4082_v0 }
 0x411   : > { %5810 = shalt.err (!%p5807_p1)
}
 0x412   : > { %s5811_s26 = scalar_lea.hbm %s7511_s15, 256  ;;  %s5815_s7 = scalar_lea.hbm %s7558_s5, 512 }
 0x413   : > { %p5812_p2 = scmp.ne.s32.totalorder %s7511_s15, %s5811_s26  ;;  %p5816_p7 = scmp.lt.s32.totalorder %s7511_s15, %s7558_s5 }
 0x414   : > { %p5817_p6 = scmp.lt.s32.totalorder %s5815_s7, %s5811_s26 }
 0x415   : > { %p5813_p3 = pnand %p5812_p2, %p5941_p5 }
 0x416   : > { %p5818_p8 = por %p5817_p6, %p5816_p7 }
 0x417   : > { %p5814_p4 = pneg %p5813_p3 }
 0x419   : > { %p5819_p9 = pnand %p5818_p8, %p5814_p4 }
 0x41b   : > { %5822 = shalt.err (!%p5819_p9)
}
 0x41c   : > { %s5871_s10 = smov 128   ;;  %s5872_s12 = smov 8  }
 0x41d   : > { %5575 = dma.vmem_to_hbm [thread:$0]  (%p5941_p5), %s7506_s11, 256, %s7511_s15, %s7513_s16, %s5871_s10, %s5871_s10, %s5872_s12  }
 0x41e PF: > { %p5587_p10 = scmp.ge.s32.totalorder %s5861_s21, 2  ;;  %s4116_s13 = sand.u32 1, %s5849_s18  }
 0x41f   : > { %p7562_p11 = scmp.ne.s32.totalorder %s7560_s29, 0  ;;  %s4117_s14 = scalar_lea.sflag [#allocation4], %s4116_s13 }
 0x421   : > { %p5582_p12 = pnand %p5587_p10, %p7562_p11 }
 0x423   : > { %p5583_p13 = pneg %p5582_p12 }
 0x425   : > { %5844 = dma.done.wait (%p5583_p13), %s4117_s14, 256  }
 0x426   : > { %5846 = vsyncadd (%p5583_p13), %s4117_s14, 4294967040  ;;  %p16_p0 = scmp.ge.s32.totalorder %s5928_s24, 4   ;;  %s7563_s18 = smov %s5853_s19 }
 0x427   : > { %s7564_s19 = smov %s5857_s20  ;;  %s7565_s20 = smov %s5939_s27 }
 0x428   : > { %s7566_s21 = smov %s5928_s24  ;;  %18 = sbr.rel (!%p16_p0) target bundleno = 4 (0x4), region = 83 }
 0x42d   :  { %4122 = vsyncpa [#allocation3], 1 }
 0x42e   :  { %4124 = vsyncpa [#allocation3 + $0x1], 1 }
 0x42f   :  { %4125 = vsyncpa [#allocation4], 1 }
 0x430   :  { %4127 = vsyncpa [#allocation4 + $0x1], 1 }

</bundles_post_ra>
